<compile_context>
chip_gen: v7x
topology: tpu7x:2x2x1
jax: 0.10.0
libtpu: 0.0.40
codegen_flags: <defaults>
</compile_context>

<pallas_src>
import functools
import math

import jax
import jax.numpy as jnp
import numpy as np
from jax import lax
from jax.experimental import pallas as pl
from jax.experimental.pallas import tpu as pltpu


# --------------------------------------------------------------------------
# Host-side (NumPy, float64) construction of the fixed geometry operators.
# --------------------------------------------------------------------------
def _rotation_sampling_matrix_np(H, W, theta):
    """M such that (M @ img.reshape(H*W)) == grid_sample(img, affine_grid(theta)),
    matching torch align_corners=False, mode='bilinear', padding_mode='zeros',
    with theta = [[cos, -sin, 0], [sin, cos, 0]]."""
    cos_t, sin_t = math.cos(theta), math.sin(theta)
    ws = np.arange(W, dtype=np.float64)
    hs = np.arange(H, dtype=np.float64)
    x_n = (2.0 * ws + 1.0) / W - 1.0          # affine_grid base coords
    y_n = (2.0 * hs + 1.0) / H - 1.0
    X = np.broadcast_to(x_n[None, :], (H, W))
    Y = np.broadcast_to(y_n[:, None], (H, W))
    gx = cos_t * X - sin_t * Y
    gy = sin_t * X + cos_t * Y
    ix = ((gx + 1.0) * W - 1.0) / 2.0         # un-normalize (align_corners=False)
    iy = ((gy + 1.0) * H - 1.0) / 2.0
    x0 = np.floor(ix)
    y0 = np.floor(iy)

    HW = H * W
    M = np.zeros((HW, HW), dtype=np.float64)
    rows = np.arange(HW)
    for dx, dy in ((0, 0), (1, 0), (0, 1), (1, 1)):
        xc = x0 + dx
        yc = y0 + dy
        w = ((1.0 - np.abs(ix - xc)) * (1.0 - np.abs(iy - yc))).reshape(HW)
        valid = ((xc >= 0) & (xc < W) & (yc >= 0) & (yc < H)).reshape(HW)
        cols = np.where(valid, (yc * W + xc).reshape(HW), 0.0).astype(np.int64)
        np.add.at(M, (rows, cols), np.where(valid, w, 0.0))
    return M


def _shift_matrices_np(H, W, K):
    """S[t] with S[t] @ img_flat == img shifted by tap (dy, dx), zero padded."""
    pad = K // 2
    HW = H * W
    out_h = np.repeat(np.arange(H), W)
    out_w = np.tile(np.arange(W), H)
    rows = np.arange(HW)
    mats = np.zeros((K * K, HW, HW), dtype=np.float64)
    for dy in range(K):
        for dx in range(K):
            t = dy * K + dx
            in_h = out_h + dy - pad
            in_w = out_w + dx - pad
            valid = (in_h >= 0) & (in_h < H) & (in_w >= 0) & (in_w < W)
            cols = np.where(valid, in_h * W + in_w, 0)
            mats[t, rows[valid], cols[valid]] = 1.0
    return mats


def _pick_bblk(B, C, O, cap=32):
    """Largest divisor of B (<= cap) keeping sublane-friendly block rows."""
    for d in range(min(B, cap), 0, -1):
        if B % d == 0 and (d == B or ((d * C) % 8 == 0 and (d * O) % 8 == 0)):
            return d
    return B


# --------------------------------------------------------------------------
# Pallas kernel: one batch block per grid step, two MXU matmuls.
# --------------------------------------------------------------------------
def _rotated_conv_kernel(x_ref, g_ref, w_ref, brot_ref, o_ref, *, kk, hw):
    # x_ref   : (Bblk*C, HW)            activations for this batch block
    # g_ref   : (HW, KK*HW)             folded rotate->shift->rotate-back taps (lanes)
    # w_ref   : (Bblk*O, KK*Bblk*C)     block-diagonal (over batch) conv weights
    # brot_ref: (Bblk*O, HW)            pre-rotated bias (float32)
    # o_ref   : (Bblk*O, HW)
    # 1) Wide spatial matmul: all KK taps in a single MXU pass.
    y = jnp.dot(x_ref[...], g_ref[...],
                preferred_element_type=jnp.float32)          # (Bblk*C, KK*HW) f32
    # Move taps from lanes into the contraction (sublane) dim; rows ordered (t, b, c).
    # Slices are at multiples of HW (lane-aligned), pieces are full 8-row tiles.
    ycat = jnp.concatenate([y[:, t * hw:(t + 1) * hw] for t in range(kk)], axis=0)
    ycat = ycat.astype(w_ref.dtype)
    # 2) Fused channel/tap mix for the whole batch block + pre-rotated bias.
    out = jnp.dot(w_ref[...], ycat,
                  preferred_element_type=jnp.float32) + brot_ref[...]
    o_ref[...] = out.astype(o_ref.dtype)


def rotated_conv2d(x, weight, bias, angle_rad, *, compute_dtype=jnp.bfloat16,
                   bblk=None):
    """x: (B, C, H, W) NCHW; weight: (O, C, K, K); bias: (O,). Returns (B, O, H, W) f32."""
    B, C, H, W = x.shape
    O, Cw, K, K2 = weight.shape
    assert Cw == C and K == K2
    HW, KK = H * W, K * K

    if bblk is None:
        bblk = _pick_bblk(B, C, O)
    assert B % bblk == 0
    nblk = B // bblk

    # ---- host precompute (float64): fold rotations into per-tap operators ----
    Mf = _rotation_sampling_matrix_np(H, W, angle_rad)     # rotate forward
    Mb = _rotation_sampling_matrix_np(H, W, -angle_rad)    # rotate back
    S = _shift_matrices_np(H, W, K)                        # (KK, HW, HW)
    # Applied on the right of row-vectors:  x_row @ G_t == (Mb @ S_t @ Mf) @ x_col
    Gcat = np.concatenate([(Mb @ S[t] @ Mf).T for t in range(KK)], axis=1)  # (HW, KK*HW)

    # Block-diagonal (over batch) conv weights matching ycat row order (t, b, c).
    w_np = np.asarray(weight, dtype=np.float64).reshape(O, C, KK)
    Wbd = np.zeros((bblk * O, KK * bblk * C), dtype=np.float64)
    for t in range(KK):
        for b in range(bblk):
            col0 = (t * bblk + b) * C
            Wbd[b * O:(b + 1) * O, col0:col0 + C] = w_np[:, :, t]

    # Pre-rotated bias:  bias[o] * (Mb @ 1), tiled over the batch block.
    b_np = np.asarray(bias, dtype=np.float64)
    brot_np = np.tile(np.outer(b_np, Mb.sum(axis=1)), (bblk, 1))   # (bblk*O, HW)

    gcat = jnp.asarray(Gcat, dtype=compute_dtype)
    wbd = jnp.asarray(Wbd, dtype=compute_dtype)
    brot = jnp.asarray(brot_np, dtype=jnp.float32)
    x_rows = x.reshape(B * C, HW).astype(compute_dtype)

    kernel = functools.partial(_rotated_conv_kernel, kk=KK, hw=HW)

    itemsize = jnp.dtype(compute_dtype).itemsize
    operand_bytes = (gcat.size + wbd.size) * itemsize + (brot.size + B * O * HW) * 4
    vmem_limit = int(min(96 * 2**20, max(16 * 2**20, 4 * operand_bytes)))

    out = pl.pallas_call(
        kernel,
        out_shape=jax.ShapeDtypeStruct((B * O, HW), jnp.float32),
        grid_spec=pltpu.PrefetchScalarGridSpec(
            num_scalar_prefetch=0,
            grid=(nblk,),
            in_specs=[
                pl.BlockSpec((bblk * C, HW), lambda i: (i, 0)),
                pl.BlockSpec((HW, KK * HW), lambda i: (0, 0)),
                pl.BlockSpec((bblk * O, KK * bblk * C), lambda i: (0, 0)),
                pl.BlockSpec((bblk * O, HW), lambda i: (0, 0)),
            ],
            out_specs=pl.BlockSpec((bblk * O, HW), lambda i: (i, 0)),
        ),
        compiler_params=pltpu.CompilerParams(
            dimension_semantics=("parallel",),
            vmem_limit_bytes=vmem_limit,
        ),
    )(x_rows, gcat, wbd, brot)
    return out.reshape(B, O, H, W)


# --------------------------------------------------------------------------
# Pure-JAX reference (gather-based grid_sample + lax conv) for a sanity check.
# --------------------------------------------------------------------------
def _grid_sample_ref(x, theta):
    B, C, H, W = x.shape
    cos_t, sin_t = math.cos(theta), math.sin(theta)
    x_n = (2.0 * jnp.arange(W, dtype=jnp.float32) + 1.0) / W - 1.0
    y_n = (2.0 * jnp.arange(H, dtype=jnp.float32) + 1.0) / H - 1.0
    X = jnp.broadcast_to(x_n[None, :], (H, W))
    Y = jnp.broadcast_to(y_n[:, None], (H, W))
    gx = cos_t * X - sin_t * Y
    gy = sin_t * X + cos_t * Y
    ix = ((gx + 1.0) * W - 1.0) / 2.0
    iy = ((gy + 1.0) * H - 1.0) / 2.0
    x0, y0 = jnp.floor(ix), jnp.floor(iy)
    out = jnp.zeros_like(x)
    for dx, dy in ((0, 0), (1, 0), (0, 1), (1, 1)):
        xc, yc = x0 + dx, y0 + dy
        w = (1.0 - jnp.abs(ix - xc)) * (1.0 - jnp.abs(iy - yc))
        valid = (xc >= 0) & (xc < W) & (yc >= 0) & (yc < H)
        xi = jnp.clip(xc, 0, W - 1).astype(jnp.int32)
        yi = jnp.clip(yc, 0, H - 1).astype(jnp.int32)
        out = out + x[:, :, yi, xi] * jnp.where(valid, w, 0.0)[None, None]
    return out


def rotated_conv2d_ref(x, weight, bias, angle_rad):
    xr = _grid_sample_ref(x, angle_rad)
    y = lax.conv_general_dilated(
        xr, weight, window_strides=(1, 1), padding="SAME",
        dimension_numbers=("NCHW", "OIHW", "NCHW"))
    y = y + bias[None, :, None, None]
    return _grid_sample_ref(y, -angle_rad)


if __name__ == "__main__":
    B, C_in, C_out, H, W, K = 2, 4, 8, 16, 16, 3
    angle_rad = math.radians(45.0)

    key = jax.random.PRNGKey(0)
    kx, kw, kb = jax.random.split(key, 3)
    x = jax.random.normal(kx, (B, C_in, H, W), dtype=jnp.float32)
    fan_in = C_in * K * K
    bound = 1.0 / math.sqrt(fan_in)
    weight = jax.random.uniform(kw, (C_out, C_in, K, K), jnp.float32, -bound, bound)
    bias = jax.random.uniform(kb, (C_out,), jnp.float32, -bound, bound)

    y_ref = jax.block_until_ready(rotated_conv2d_ref(x, weight, bias, angle_rad))

    # fp32 check path (tighter bound than the bf16 path).
    y_f32 = jax.block_until_ready(
        rotated_conv2d(x, weight, bias, angle_rad, compute_dtype=jnp.float32))
    np.testing.assert_allclose(np.asarray(y_f32), np.asarray(y_ref),
                               rtol=2e-2, atol=2e-2)

    # Default fast path: bf16 operands, f32 accumulation (looser bf16 tolerance).
    y_bf16 = jax.block_until_ready(rotated_conv2d(x, weight, bias, angle_rad))
    np.testing.assert_allclose(np.asarray(y_bf16), np.asarray(y_ref),
                               rtol=5e-2, atol=5e-2)

    print("KERNEL_OK")
</pallas_src>

<mosaic_0001>
module attributes {stable_mosaic.version = 11 : i64} {
  func.func @_rotated_conv_kernel(%arg0: i32, %arg1: memref<8x256xf32, #tpu.memory_space<vmem>>, %arg2: memref<256x2304xf32, #tpu.memory_space<vmem>>, %arg3: memref<16x72xf32, #tpu.memory_space<vmem>>, %arg4: memref<16x256xf32, #tpu.memory_space<vmem>>, %arg5: memref<16x256xf32, #tpu.memory_space<vmem>>) attributes {dimension_semantics = [#tpu.dimension_semantics<parallel>], iteration_bounds = array<i64: 1>, scalar_prefetch = 0 : i64, scratch_operands = 0 : i64, tpu.core_type = #tpu.core_type<tc>, window_params = [{transform_indices = @transform_0, window_bounds = array<i64: 8, 256>}, {pipeline_mode = #tpu.pipeline_mode<synchronous>, transform_indices = @transform_1, window_bounds = array<i64: 256, 2304>}, {pipeline_mode = #tpu.pipeline_mode<synchronous>, transform_indices = @transform_2, window_bounds = array<i64: 16, 72>}, {pipeline_mode = #tpu.pipeline_mode<synchronous>, transform_indices = @transform_3, window_bounds = array<i64: 16, 256>}, {transform_indices = @transform_4, window_bounds = array<i64: 16, 256>}]} {
    %c0 = arith.constant 0 : index
    %c0_0 = arith.constant 0 : index
    %0 = vector.load %arg1[%c0, %c0_0] : memref<8x256xf32, #tpu.memory_space<vmem>>, vector<8x256xf32>
    %c0_1 = arith.constant 0 : index
    %c0_2 = arith.constant 0 : index
    %1 = vector.load %arg2[%c0_1, %c0_2] : memref<256x2304xf32, #tpu.memory_space<vmem>>, vector<256x2304xf32>
    %cst = arith.constant dense<0.000000e+00> : vector<8x2304xf32>
    %2 = tpu.matmul %0, %1, %cst {dimension_numbers = #tpu.dot_dimension_numbers<[1], [0], [0], [1], [0, 0, 1, 1], [], []>} : vector<8x256xf32>, vector<256x2304xf32>, vector<8x2304xf32> -> vector<8x2304xf32>
    %3 = vector.extract_strided_slice %2 {offsets = [0, 0], sizes = [8, 256], strides = [1, 1]} : vector<8x2304xf32> to vector<8x256xf32>
    %4 = vector.extract_strided_slice %2 {offsets = [0, 256], sizes = [8, 256], strides = [1, 1]} : vector<8x2304xf32> to vector<8x256xf32>
    %5 = vector.extract_strided_slice %2 {offsets = [0, 512], sizes = [8, 256], strides = [1, 1]} : vector<8x2304xf32> to vector<8x256xf32>
    %6 = vector.extract_strided_slice %2 {offsets = [0, 768], sizes = [8, 256], strides = [1, 1]} : vector<8x2304xf32> to vector<8x256xf32>
    %7 = vector.extract_strided_slice %2 {offsets = [0, 1024], sizes = [8, 256], strides = [1, 1]} : vector<8x2304xf32> to vector<8x256xf32>
    %8 = vector.extract_strided_slice %2 {offsets = [0, 1280], sizes = [8, 256], strides = [1, 1]} : vector<8x2304xf32> to vector<8x256xf32>
    %9 = vector.extract_strided_slice %2 {offsets = [0, 1536], sizes = [8, 256], strides = [1, 1]} : vector<8x2304xf32> to vector<8x256xf32>
    %10 = vector.extract_strided_slice %2 {offsets = [0, 1792], sizes = [8, 256], strides = [1, 1]} : vector<8x2304xf32> to vector<8x256xf32>
    %11 = vector.extract_strided_slice %2 {offsets = [0, 2048], sizes = [8, 256], strides = [1, 1]} : vector<8x2304xf32> to vector<8x256xf32>
    %12 = tpu.concatenate %3, %4, %5, %6, %7, %8, %9, %10, %11 in 0 : vector<8x256xf32>, vector<8x256xf32>, vector<8x256xf32>, vector<8x256xf32>, vector<8x256xf32>, vector<8x256xf32>, vector<8x256xf32>, vector<8x256xf32>, vector<8x256xf32> -> vector<72x256xf32>
    %c0_3 = arith.constant 0 : index
    %c0_4 = arith.constant 0 : index
    %13 = vector.load %arg3[%c0_3, %c0_4] : memref<16x72xf32, #tpu.memory_space<vmem>>, vector<16x72xf32>
    %cst_5 = arith.constant dense<0.000000e+00> : vector<16x256xf32>
    %14 = tpu.matmul %13, %12, %cst_5 {dimension_numbers = #tpu.dot_dimension_numbers<[1], [0], [0], [1], [0, 0, 1, 1], [], []>} : vector<16x72xf32>, vector<72x256xf32>, vector<16x256xf32> -> vector<16x256xf32>
    %c0_6 = arith.constant 0 : index
    %c0_7 = arith.constant 0 : index
    %15 = vector.load %arg4[%c0_6, %c0_7] : memref<16x256xf32, #tpu.memory_space<vmem>>, vector<16x256xf32>
    %16 = arith.addf %14, %15 : vector<16x256xf32>
    %c0_8 = arith.constant 0 : index
    %c0_9 = arith.constant 0 : index
    %17 = vector.load %arg5[%c0_8, %c0_9] : memref<16x256xf32, #tpu.memory_space<vmem>>, vector<16x256xf32>
    tpu.vector_store %arg5[%c0_8, %c0_9], %16 {strides = array<i32>} : memref<16x256xf32, #tpu.memory_space<vmem>>, vector<16x256xf32>,
    return
  }
  func.func @transform_0(%arg0: i32) -> (i32, i32) {
    %c0_i32 = arith.constant 0 : i32
    %c0_i32_0 = arith.constant 0 : i32
    return %arg0, %c0_i32 : i32, i32
  }
  func.func @transform_1(%arg0: i32) -> (i32, i32) {
    %c0_i32 = arith.constant 0 : i32
    %c0_i32_0 = arith.constant 0 : i32
    %c0_i32_1 = arith.constant 0 : i32
    return %c0_i32, %c0_i32_0 : i32, i32
  }
  func.func @transform_2(%arg0: i32) -> (i32, i32) {
    %c0_i32 = arith.constant 0 : i32
    %c0_i32_0 = arith.constant 0 : i32
    %c0_i32_1 = arith.constant 0 : i32
    return %c0_i32, %c0_i32_0 : i32, i32
  }
  func.func @transform_3(%arg0: i32) -> (i32, i32) {
    %c0_i32 = arith.constant 0 : i32
    %c0_i32_0 = arith.constant 0 : i32
    %c0_i32_1 = arith.constant 0 : i32
    return %c0_i32, %c0_i32_0 : i32, i32
  }
  func.func @transform_4(%arg0: i32) -> (i32, i32) {
    %c0_i32 = arith.constant 0 : i32
    %c0_i32_0 = arith.constant 0 : i32
    return %arg0, %c0_i32 : i32, i32
  }
}

</mosaic_0001>

<bundles_post_ra>
// kernel: tpu_custom_call.1
= control target key start
LH: loop header
LB: loop body
LE: loop exit
PB: predicated region body
PF: predicated region fallthrough
CT: control target
= control target key end

     0   :  { %9 = vsyncpa [#allocation3], 0  ;;  %s2256_s0 = inlined_call_operand.hbm [shape: f32[8,256], index: 0, kind: input, shape index: {}]   ;;  %s2257_s1 = inlined_call_operand.hbm [shape: f32[256,2304], index: 1, kind: input, shape index: {}]   ;;  %s2258_s2 = inlined_call_operand.hbm [shape: f32[16,72], index: 2, kind: input, shape index: {}]   ;;  %s2259_s3 = inlined_call_operand.hbm [shape: f32[16,256], index: 3, kind: input, shape index: {}]   ;;  %s2260_s4 = inlined_call_operand.hbm [shape: f32[16,256], index: 4, kind: output, shape index: {}]  }
   0x1   :  { %10 = vsyncpa [#allocation6], 0 }
   0x2   :  { %11 = vsyncpa [#allocation9], 0 }
   0x3   :  { %12 = vsyncpa [#allocation4], 0  ;;  %s2127_s15 = smov [#allocation5]   ;;  %s2009_s19 = scalar_lea.hbm %s2257_s1, 73728 }
   0x4   :  { %s28_s16 = sshll.u32 %s2127_s15, 4  ;;  %p2010_p0 = scmp.ne.s32.totalorder %s2257_s1, %s2009_s19  ;;  %s29_s16 = int_to_ptr.vmem [resolvable:$true] %s28_s16 }
   0x5   :  { %p2013_p1 = scmp.lt.u32.totalorder %s2009_s19, %s2257_s1 }
   0x7   :  { %p2015_p2 = pnand %p2013_p1, %p2010_p0 }
   0x9   :  { %2018 = shalt.err (!%p2015_p2)
}
   0xa   :  { %s2019_s24 = scalar_lea.vmem %s29_s16, 73728  ;;  %p2024_p4 = scmp.lt.s32.totalorder %s29_s16, %s29_s16 }
   0xb   :  { %p2020_p3 = scmp.ne.s32.totalorder %s29_s16, %s2019_s24  ;;  %p2025_p5 = scmp.lt.s32.totalorder %s2019_s24, %s2019_s24 }
   0xd   :  { %p2026_p6 = por %p2025_p5, %p2024_p4 }
   0xf   :  { %p2027_p7 = pnand %p2026_p6, %p2020_p3 }
  0x11   :  { %2030 = shalt.err (!%p2027_p7)
}
  0x12   :  { %s2128_s25 = smov 2304   ;;  %s2129_s26 = smov 144  }
  0x13   :  { %34 = dma.hbm_to_vmem [thread:$0]  %s2257_s1, 73728, %s29_s16, [#allocation6], %s2128_s25, %s2128_s25, %s2129_s26  }
  0x14   :  { %s2130_s29 = smov [#allocation2]   ;;  %s2131_s5 = smov [#allocation7]  }
  0x15   :  { %s19_s30 = sshll.u32 %s2130_s29, 4  ;;  %s40_s6 = sshll.u32 %s2131_s5, 4  ;;  %s20_s30 = int_to_ptr.vmem [resolvable:$true] %s19_s30  ;;  %s41_s6 = int_to_ptr.vmem [resolvable:$true] %s40_s6 }
  0x16   :  { %s2031_s9 = scalar_lea.hbm %s2256_s0, 256 }
  0x17   :  { %p2032_p8 = scmp.ne.s32.totalorder %s2256_s0, %s2031_s9  ;;  %p2035_p9 = scmp.lt.u32.totalorder %s2031_s9, %s2256_s0 }
  0x19   :  { %p2037_p10 = pnand %p2035_p9, %p2032_p8 }
  0x1b   :  { %2040 = shalt.err (!%p2037_p10)
}
  0x1c   :  { %s2041_s1 = scalar_lea.vmem %s20_s30, 256  ;;  %p2046_p12 = scmp.lt.s32.totalorder %s20_s30, %s20_s30 }
  0x1d   :  { %p2042_p11 = scmp.ne.s32.totalorder %s20_s30, %s2041_s1  ;;  %p2047_p13 = scmp.lt.s32.totalorder %s2041_s1, %s2041_s1 }
  0x1f   :  { %p2048_p0 = por %p2047_p13, %p2046_p12 }
  0x21   :  { %p2049_p1 = pnand %p2048_p0, %p2042_p11 }
  0x23   :  { %2052 = shalt.err (!%p2049_p1)
}
  0x24   :  { %22 = dma.hbm_to_vmem [thread:$0]  %s2256_s0, 256, %s20_s30, [#allocation3]  }
  0x25   :  { %s2053_s18 = scalar_lea.hbm %s2258_s2, 256 }
  0x26   :  { %p2054_p2 = scmp.ne.s32.totalorder %s2258_s2, %s2053_s18  ;;  %p2057_p3 = scmp.lt.u32.totalorder %s2053_s18, %s2258_s2 }
  0x28   :  { %p2059_p4 = pnand %p2057_p3, %p2054_p2 }
  0x2a   :  { %2062 = shalt.err (!%p2059_p4)
}
  0x2b   :  { %s2063_s23 = scalar_lea.vmem %s41_s6, 256  ;;  %p2068_p6 = scmp.lt.s32.totalorder %s41_s6, %s41_s6 }
  0x2c   :  { %p2064_p5 = scmp.ne.s32.totalorder %s41_s6, %s2063_s23  ;;  %p2069_p7 = scmp.lt.s32.totalorder %s2063_s23, %s2063_s23 }
  0x2e   :  { %p2070_p8 = por %p2069_p7, %p2068_p6 }
  0x30   :  { %p2071_p9 = pnand %p2070_p8, %p2064_p5 }
  0x32   :  { %2074 = shalt.err (!%p2071_p9)
}
  0x33   :  { %s2132_s0 = smov 128   ;;  %s2133_s24 = smov 8  }
  0x34   :  { %46 = dma.hbm_to_vmem [thread:$0]  %s2258_s2, 256, %s41_s6, [#allocation6], %s2132_s0, %s2132_s0, %s2133_s24  }
  0x35   :  { %s2134_s27 = smov [#allocation8]   ;;  %s2075_s5 = scalar_lea.hbm %s2259_s3, 512 }
  0x36   :  { %s52_s28 = sshll.u32 %s2134_s27, 4  ;;  %p2076_p10 = scmp.ne.s32.totalorder %s2259_s3, %s2075_s5  ;;  %s53_s28 = int_to_ptr.vmem [resolvable:$true] %s52_s28 }
  0x37   :  { %p2079_p11 = scmp.lt.u32.totalorder %s2075_s5, %s2259_s3 }
  0x39   :  { %p2081_p12 = pnand %p2079_p11, %p2076_p10 }
  0x3b   :  { %2084 = shalt.err (!%p2081_p12)
}
  0x3c   :  { %s2085_s11 = scalar_lea.vmem %s53_s28, 512  ;;  %p2090_p0 = scmp.lt.s32.totalorder %s53_s28, %s53_s28 }
  0x3d   :  { %p2086_p13 = scmp.ne.s32.totalorder %s53_s28, %s2085_s11  ;;  %p2091_p1 = scmp.lt.s32.totalorder %s2085_s11, %s2085_s11 }
  0x3f   :  { %p2092_p2 = por %p2091_p1, %p2090_p0 }
  0x41   :  { %p2093_p3 = pnand %p2092_p2, %p2086_p13 }
  0x43   :  { %2096 = shalt.err (!%p2093_p3)
}
  0x44   :  { %s2135_s2 = smov 256   ;;  %s2136_s6 = smov 16  }
  0x45   :  { %58 = dma.hbm_to_vmem [thread:$0]  %s2259_s3, 512, %s53_s28, [#allocation9], %s2135_s2, %s2135_s2, %s2136_s6  }
  0x46   :  { %2119 = dma.done.wait [#allocation3], 256  }
  0x47   :  { %2120 = vsyncadd [#allocation3], 4294967040 }
  0x48   :  { %2121 = dma.done.wait [#allocation6], 73984  }
  0x49   :  { %2122 = vsyncadd [#allocation6], 4294893312 }
  0x4a   :  { %2123 = dma.done.wait [#allocation9], 512  }
  0x4b   :  { %2124 = vsyncadd [#allocation9], 4294966784  ;;  %v74_v0 = vld [vmem:[#allocation5 + $0x8] sm:$0xff]  ;;  %v92_v1 = vld [vmem:[#allocation5 + $0x98] sm:$0xff]  ;;  %vm1294_vm0 = vcmask 588800   ;;  %s2138_s3 = smov [#allocation10]  }
  0x4c   :  { %v76_v2 = vld [vmem:[#allocation5 + $0x18] sm:$0xff]  ;;  %v1403_v3 = vpack.c.bf16 %v92_v1, %v74_v0  ;;  %v94_v4 = vld [vmem:[#allocation5 + $0xa8] sm:$0xff]  ;;  %v73_v5 = vld [vmem:[#allocation5] sm:$0xff]  ;;  %s1387_s1 = sshll.u32 %s2138_s3, 4  ;;  %s1388_s1 = int_to_ptr.vmem [resolvable:$true] %s1387_s1 }
  0x4d   :  { %v91_v6 = vld [vmem:[#allocation5 + $0x90] sm:$0xff]  ;;  %v1467_v7 = vpack.c.bf16 %v94_v4, %v76_v2  ;;  %v93_v10 = vld [vmem:[#allocation5 + $0xa0] sm:$0xff]  ;;  %v110_v11 = vld [vmem:[#allocation5 + $0x128] sm:$0xff]  ;;  %s2097_s14 = scalar_lea.vmem %s1388_s1, 512  ;;  %p2102_p5 = scmp.lt.s32.totalorder %s1388_s1, %s1388_s1 }
  0x4e   :  { %v1405_v8 = vpack.c.bf16 %v91_v6, %v73_v5  ;;  %v75_v9 = vld [vmem:[#allocation5 + $0x10] sm:$0xff]  ;;  %1404 = vmatprep.subr.bf16.mxu0 %v1403_v3  ;;  %v128_v13 = vld [vmem:[#allocation5 + $0x1b8] sm:$0xff]  ;;  %v130_v15 = vld [vmem:[#allocation5 + $0x1c8] sm:$0xff]  ;;  %p2098_p4 = scmp.ne.s32.totalorder %s1388_s1, %s2097_s14  ;;  %p2103_p6 = scmp.lt.s32.totalorder %s2097_s14, %s2097_s14 }
  0x4f   :  { %v1469_v12 = vpack.c.bf16 %v93_v10, %v75_v9  ;;  %v112_v14 = vld [vmem:[#allocation5 + $0x138] sm:$0xff]  ;;  %1468 = vmatprep.subr.bf16.mxu1 %v1467_v7  ;;  %v1407_v16 = vpack.c.bf16 %v128_v13, %v110_v11  ;;  %v109_v18 = vld [vmem:[#allocation5 + $0x120] sm:$0xff]  ;;  %v127_v19 = vld [vmem:[#allocation5 + $0x1b0] sm:$0xff] }
  0x50   :  { %1406 = vmatpush1.bf16.msra.mxu0 %v1405_v8  ;;  %v1471_v17 = vpack.c.bf16 %v130_v15, %v112_v14  ;;  %v111_v20 = vld [vmem:[#allocation5 + $0x130] sm:$0xff]  ;;  %v1409_v21 = vpack.c.bf16 %v127_v19, %v109_v18  ;;  %v129_v22 = vld [vmem:[#allocation5 + $0x1c0] sm:$0xff]  ;;  %v146_v23 = vld [vmem:[#allocation5 + $0x248] sm:$0xff]  ;;  %p2104_p7 = por %p2103_p6, %p2102_p5 }
  0x51   :  { %1470 = vmatpush1.bf16.msra.mxu1 %v1469_v12  ;;  %v164_v24 = vld [vmem:[#allocation5 + $0x2d8] sm:$0xff]  ;;  %1408 = vmatprep.subr.bf16.mxu0 %v1407_v16  ;;  %v1473_v25 = vpack.c.bf16 %v129_v22, %v111_v20  ;;  %v166_v28 = vld [vmem:[#allocation5 + $0x2e8] sm:$0xff]  ;;  %v145_v29 = vld [vmem:[#allocation5 + $0x240] sm:$0xff] }
  0x52   :  { %1472 = vmatprep.subr.bf16.mxu1 %v1471_v17  ;;  %v1411_v26 = vpack.c.bf16 %v164_v24, %v146_v23  ;;  %v148_v27 = vld [vmem:[#allocation5 + $0x258] sm:$0xff]  ;;  %v163_v31 = vld [vmem:[#allocation5 + $0x2d0] sm:$0xff]  ;;  %v165_v33 = vld [vmem:[#allocation5 + $0x2e0] sm:$0xff]  ;;  %p2105_p8 = pnand %p2104_p7, %p2098_p4 }
  0x53   :  { %v1475_v30 = vpack.c.bf16 %v166_v28, %v148_v27  ;;  %v147_v32 = vld [vmem:[#allocation5 + $0x250] sm:$0xff]  ;;  %v1413_v34 = vpack.c.bf16 %v163_v31, %v145_v29  ;;  %v182_v35 = vld [vmem:[#allocation5 + $0x368] sm:$0xff]  ;;  %v200_v36 = vld [vmem:[#allocation5 + $0x3f8] sm:$0xff] }
  0x54   :  { %1410 = vmatpush1.bf16.msra.mxu0 %v1409_v21  ;;  %v184_v37 = vld [vmem:[#allocation5 + $0x378] sm:$0xff]  ;;  %v1477_v38 = vpack.c.bf16 %v165_v33, %v147_v32  ;;  %v1415_v39 = vpack.c.bf16 %v200_v36, %v182_v35  ;;  %v202_v40 = vld [vmem:[#allocation5 + $0x408] sm:$0xff]  ;;  %v181_v41 = vld [vmem:[#allocation5 + $0x360] sm:$0xff] }
  0x55   :  { %1474 = vmatpush1.bf16.msra.mxu1 %v1473_v25  ;;  %1412 = vmatprep.subr.bf16.mxu0 %v1411_v26  ;;  %v199_v42 = vld [vmem:[#allocation5 + $0x3f0] sm:$0xff]  ;;  %v1479_v43 = vpack.c.bf16 %v202_v40, %v184_v37  ;;  %v201_v45 = vld [vmem:[#allocation5 + $0x400] sm:$0xff]  ;;  %v218_v46 = vld [vmem:[#allocation5 + $0x488] sm:$0xff] }
  0x56   :  { %1476 = vmatprep.subr.bf16.mxu1 %v1475_v30  ;;  %v183_v44 = vld [vmem:[#allocation5 + $0x370] sm:$0xff]  ;;  %v236_v47 = vld [vmem:[#allocation5 + $0x518] sm:$0xff]  ;;  %v238_v49 = vld [vmem:[#allocation5 + $0x528] sm:$0xff]  ;;  %v1417_v50 = vpack.c.bf16 %v199_v42, %v181_v41 }
  0x57   :  { %v220_v48 = vld [vmem:[#allocation5 + $0x498] sm:$0xff]  ;;  %v1481_v51 = vpack.c.bf16 %v201_v45, %v183_v44  ;;  %v1419_v52 = vpack.c.bf16 %v236_v47, %v218_v46  ;;  %v217_v53 = vld [vmem:[#allocation5 + $0x480] sm:$0xff]  ;;  %v235_v54 = vld [vmem:[#allocation5 + $0x510] sm:$0xff] }
  0x58   :  { %1414 = vmatpush1.bf16.msra.mxu0 %v1413_v34  ;;  %v219_v55 = vld [vmem:[#allocation5 + $0x490] sm:$0xff]  ;;  %v1483_v56 = vpack.c.bf16 %v238_v49, %v220_v48  ;;  %v237_v57 = vld [vmem:[#allocation5 + $0x520] sm:$0xff]  ;;  %v254_v58 = vld [vmem:[#allocation5 + $0x5a8] sm:$0xff]  ;;  %v1421_v62 = vpack.c.bf16 %v235_v54, %v217_v53 }
  0x59   :  { %1478 = vmatpush1.bf16.msra.mxu1 %v1477_v38  ;;  %1416 = vmatprep.subr.bf16.mxu0 %v1415_v39  ;;  %v272_v59 = vld [vmem:[#allocation5 + $0x638] sm:$0xff]  ;;  %v274_v61 = vld [vmem:[#allocation5 + $0x648] sm:$0xff]  ;;  %v1485_v63 = vpack.c.bf16 %v237_v57, %v219_v55  ;;  %v253_v1 = vld [vmem:[#allocation5 + $0x5a0] sm:$0xff] }
  0x5a   :  { %1480 = vmatprep.subr.bf16.mxu1 %v1479_v43  ;;  %v256_v60 = vld [vmem:[#allocation5 + $0x5b8] sm:$0xff]  ;;  %v1423_v0 = vpack.c.bf16 %v272_v59, %v254_v58  ;;  %v271_v2 = vld [vmem:[#allocation5 + $0x630] sm:$0xff]  ;;  %v273_v5 = vld [vmem:[#allocation5 + $0x640] sm:$0xff] }
  0x5b   :  { %v255_v3 = vld [vmem:[#allocation5 + $0x5b0] sm:$0xff]  ;;  %v1487_v4 = vpack.c.bf16 %v274_v61, %v256_v60  ;;  %v290_v6 = vld [vmem:[#allocation5 + $0x6c8] sm:$0xff]  ;;  %v308_v7 = vld [vmem:[#allocation5 + $0x758] sm:$0xff]  ;;  %v1425_v10 = vpack.c.bf16 %v271_v2, %v253_v1 }
  0x5c   :  { %1418 = vmatpush1.bf16.msra.mxu0 %v1417_v50  ;;  %v292_v8 = vld [vmem:[#allocation5 + $0x6d8] sm:$0xff]  ;;  %v310_v9 = vld [vmem:[#allocation5 + $0x768] sm:$0xff]  ;;  %v1489_v11 = vpack.c.bf16 %v273_v5, %v255_v3  ;;  %v1427_v12 = vpack.c.bf16 %v308_v7, %v290_v6  ;;  %v289_v13 = vld [vmem:[#allocation5 + $0x6c0] sm:$0xff] }
  0x5d   :  { %1482 = vmatpush1.bf16.msra.mxu1 %v1481_v51  ;;  %1420 = vmatprep.subr.bf16.mxu0 %v1419_v52  ;;  %v307_v14 = vld [vmem:[#allocation5 + $0x750] sm:$0xff]  ;;  %v1491_v16 = vpack.c.bf16 %v310_v9, %v292_v8  ;;  %v309_v17 = vld [vmem:[#allocation5 + $0x760] sm:$0xff]  ;;  %v326_v18 = vld [vmem:[#allocation5 + $0x7e8] sm:$0xff] }
  0x5e   :  { %1484 = vmatprep.subr.bf16.mxu1 %v1483_v56  ;;  %v291_v15 = vld [vmem:[#allocation5 + $0x6d0] sm:$0xff]  ;;  %v344_v19 = vld [vmem:[#allocation5 + $0x878] sm:$0xff]  ;;  %v346_v21 = vld [vmem:[#allocation5 + $0x888] sm:$0xff]  ;;  %v1429_v22 = vpack.c.bf16 %v307_v14, %v289_v13 }
  0x5f   :  { %v328_v20 = vld [vmem:[#allocation5 + $0x7f8] sm:$0xff]  ;;  %v1493_v23 = vpack.c.bf16 %v309_v17, %v291_v15  ;;  %v1431_v24 = vpack.c.bf16 %v344_v19, %v326_v18  ;;  %v325_v25 = vld [vmem:[#allocation5 + $0x7e0] sm:$0xff]  ;;  %v343_v26 = vld [vmem:[#allocation5 + $0x870] sm:$0xff] }
  0x60   :  { %1422 = vmatpush1.bf16.msra.mxu0 %v1421_v62  ;;  %v327_v27 = vld [vmem:[#allocation5 + $0x7f0] sm:$0xff]  ;;  %v1495_v28 = vpack.c.bf16 %v346_v21, %v328_v20  ;;  %v345_v29 = vld [vmem:[#allocation5 + $0x880] sm:$0xff]  ;;  %v362_v30 = vld [vmem:[#allocation5 + $0x908] sm:$0xff]  ;;  %v1433_v34 = vpack.c.bf16 %v343_v26, %v325_v25 }
  0x61   :  { %1486 = vmatpush1.bf16.msra.mxu1 %v1485_v63  ;;  %1424 = vmatprep.subr.bf16.mxu0 %v1423_v0  ;;  %v380_v31 = vld [vmem:[#allocation5 + $0x998] sm:$0xff]  ;;  %v382_v33 = vld [vmem:[#allocation5 + $0x9a8] sm:$0xff]  ;;  %v1497_v35 = vpack.c.bf16 %v345_v29, %v327_v27  ;;  %v361_v37 = vld [vmem:[#allocation5 + $0x900] sm:$0xff] }
  0x62   :  { %1488 = vmatprep.subr.bf16.mxu1 %v1487_v4  ;;  %v364_v32 = vld [vmem:[#allocation5 + $0x918] sm:$0xff]  ;;  %v1435_v36 = vpack.c.bf16 %v380_v31, %v362_v30  ;;  %v379_v38 = vld [vmem:[#allocation5 + $0x990] sm:$0xff]  ;;  %v381_v41 = vld [vmem:[#allocation5 + $0x9a0] sm:$0xff] }
  0x63   :  { %v363_v39 = vld [vmem:[#allocation5 + $0x910] sm:$0xff]  ;;  %v1499_v40 = vpack.c.bf16 %v382_v33, %v364_v32  ;;  %v398_v42 = vld [vmem:[#allocation5 + $0xa28] sm:$0xff]  ;;  %v416_v43 = vld [vmem:[#allocation5 + $0xab8] sm:$0xff]  ;;  %v1437_v46 = vpack.c.bf16 %v379_v38, %v361_v37 }
  0x64   :  { %1426 = vmatpush1.bf16.msra.mxu0 %v1425_v10  ;;  %v400_v44 = vld [vmem:[#allocation5 + $0xa38] sm:$0xff]  ;;  %v418_v45 = vld [vmem:[#allocation5 + $0xac8] sm:$0xff]  ;;  %v1501_v47 = vpack.c.bf16 %v381_v41, %v363_v39  ;;  %v1439_v48 = vpack.c.bf16 %v416_v43, %v398_v42  ;;  %v397_v49 = vld [vmem:[#allocation5 + $0xa20] sm:$0xff] }
  0x65   :  { %1490 = vmatpush1.bf16.msra.mxu1 %v1489_v11  ;;  %1428 = vmatprep.subr.bf16.mxu0 %v1427_v12  ;;  %v415_v50 = vld [vmem:[#allocation5 + $0xab0] sm:$0xff]  ;;  %v1503_v52 = vpack.c.bf16 %v418_v45, %v400_v44  ;;  %v417_v53 = vld [vmem:[#allocation5 + $0xac0] sm:$0xff]  ;;  %v434_v54 = vld [vmem:[#allocation5 + $0xb48] sm:$0xff] }
  0x66   :  { %1492 = vmatprep.subr.bf16.mxu1 %v1491_v16  ;;  %v399_v51 = vld [vmem:[#allocation5 + $0xa30] sm:$0xff]  ;;  %v452_v55 = vld [vmem:[#allocation5 + $0xbd8] sm:$0xff]  ;;  %v454_v57 = vld [vmem:[#allocation5 + $0xbe8] sm:$0xff]  ;;  %v1441_v58 = vpack.c.bf16 %v415_v50, %v397_v49 }
  0x67   :  { %v436_v56 = vld [vmem:[#allocation5 + $0xb58] sm:$0xff]  ;;  %v1505_v59 = vpack.c.bf16 %v417_v53, %v399_v51  ;;  %v1443_v60 = vpack.c.bf16 %v452_v55, %v434_v54  ;;  %v433_v61 = vld [vmem:[#allocation5 + $0xb40] sm:$0xff]  ;;  %v451_v62 = vld [vmem:[#allocation5 + $0xbd0] sm:$0xff] }
  0x68   :  { %1430 = vmatpush1.bf16.msra.mxu0 %v1429_v22  ;;  %v435_v63 = vld [vmem:[#allocation5 + $0xb50] sm:$0xff]  ;;  %v1507_v0 = vpack.c.bf16 %v454_v57, %v436_v56  ;;  %v453_v1 = vld [vmem:[#allocation5 + $0xbe0] sm:$0xff]  ;;  %v470_v2 = vld [vmem:[#allocation5 + $0xc68] sm:$0xff]  ;;  %v1445_v6 = vpack.c.bf16 %v451_v62, %v433_v61 }
  0x69   :  { %1494 = vmatpush1.bf16.msra.mxu1 %v1493_v23  ;;  %1432 = vmatprep.subr.bf16.mxu0 %v1431_v24  ;;  %v488_v3 = vld [vmem:[#allocation5 + $0xcf8] sm:$0xff]  ;;  %v490_v5 = vld [vmem:[#allocation5 + $0xd08] sm:$0xff]  ;;  %v469_v7 = vld [vmem:[#allocation5 + $0xc60] sm:$0xff]  ;;  %v1509_v8 = vpack.c.bf16 %v453_v1, %v435_v63 }
  0x6a   :  { %1496 = vmatprep.subr.bf16.mxu1 %v1495_v28  ;;  %v472_v4 = vld [vmem:[#allocation5 + $0xc78] sm:$0xff]  ;;  %v1447_v9 = vpack.c.bf16 %v488_v3, %v470_v2  ;;  %v487_v10 = vld [vmem:[#allocation5 + $0xcf0] sm:$0xff]  ;;  %v489_v12 = vld [vmem:[#allocation5 + $0xd00] sm:$0xff] }
  0x6b   :  { %v471_v11 = vld [vmem:[#allocation5 + $0xc70] sm:$0xff]  ;;  %v1511_v13 = vpack.c.bf16 %v490_v5, %v472_v4  ;;  %v506_v14 = vld [vmem:[#allocation5 + $0xd88] sm:$0xff]  ;;  %v524_v15 = vld [vmem:[#allocation5 + $0xe18] sm:$0xff]  ;;  %v1449_v19 = vpack.c.bf16 %v487_v10, %v469_v7 }
  0x6c   :  { %1434 = vmatpush1.bf16.msra.mxu0 %v1433_v34  ;;  %v2215_v16 = vld [vmem:[#allocation2 + $0x8] sm:$0xff]  ;;  %v526_v18 = vld [vmem:[#allocation5 + $0xe28] sm:$0xff]  ;;  %v1513_v20 = vpack.c.bf16 %v489_v12, %v471_v11  ;;  %v1451_v21 = vpack.c.bf16 %v524_v15, %v506_v14  ;;  %v505_v22 = vld [vmem:[#allocation5 + $0xd80] sm:$0xff] }
  0x6d   :  { %1498 = vmatpush1.bf16.msra.mxu1 %v1497_v35  ;;  %1436 = vmatprep.subr.bf16.mxu0 %v1435_v36  ;;  %v508_v17 = vld [vmem:[#allocation5 + $0xd98] sm:$0xff]  ;;  %v523_v23 = vld [vmem:[#allocation5 + $0xe10] sm:$0xff]  ;;  %v525_v26 = vld [vmem:[#allocation5 + $0xe20] sm:$0xff] }
  0x6e   :  { %1500 = vmatprep.subr.bf16.mxu1 %v1499_v40  ;;  %713 = vmatprep.mubr.f32.mxu0 %v2215_v16  ;;  %v507_v24 = vld [vmem:[#allocation5 + $0xd90] sm:$0xff]  ;;  %v1515_v25 = vpack.c.bf16 %v526_v18, %v508_v17  ;;  %v542_v27 = vld [vmem:[#allocation5 + $0xea8] sm:$0xff]  ;;  %v560_v28 = vld [vmem:[#allocation5 + $0xf38] sm:$0xff]  ;;  %v1453_v31 = vpack.c.bf16 %v523_v23, %v505_v22 }
  0x6f   :  { %784 = vmatprep.mubr.f32.mxu1 %v2215_v16  ;;  %v544_v29 = vld [vmem:[#allocation5 + $0xeb8] sm:$0xff]  ;;  %v562_v30 = vld [vmem:[#allocation5 + $0xf48] sm:$0xff]  ;;  %v1517_v32 = vpack.c.bf16 %v525_v26, %v507_v24  ;;  %v1455_v33 = vpack.c.bf16 %v560_v28, %v542_v27  ;;  %v541_v34 = vld [vmem:[#allocation5 + $0xea0] sm:$0xff] }
  0x70   :  { %1438 = vmatpush1.bf16.msra.mxu0 %v1437_v46  ;;  %v559_v35 = vld [vmem:[#allocation5 + $0xf30] sm:$0xff]  ;;  %v1519_v37 = vpack.c.bf16 %v562_v30, %v544_v29  ;;  %v561_v38 = vld [vmem:[#allocation5 + $0xf40] sm:$0xff]  ;;  %v578_v39 = vld [vmem:[#allocation5 + $0xfc8] sm:$0xff] }
  0x71   :  { %1502 = vmatpush1.bf16.msra.mxu1 %v1501_v47  ;;  %1440 = vmatprep.subr.bf16.mxu0 %v1439_v48  ;;  %v543_v36 = vld [vmem:[#allocation5 + $0xeb0] sm:$0xff]  ;;  %v596_v40 = vld [vmem:[#allocation5 + $0x1058] sm:$0xff]  ;;  %v598_v42 = vld [vmem:[#allocation5 + $0x1068] sm:$0xff]  ;;  %v1457_v43 = vpack.c.bf16 %v559_v35, %v541_v34 }
  0x72   :  { %1504 = vmatprep.subr.bf16.mxu1 %v1503_v52  ;;  %v580_v41 = vld [vmem:[#allocation5 + $0xfd8] sm:$0xff]  ;;  %v1521_v44 = vpack.c.bf16 %v561_v38, %v543_v36  ;;  %v1459_v45 = vpack.c.bf16 %v596_v40, %v578_v39  ;;  %v577_v46 = vld [vmem:[#allocation5 + $0xfc0] sm:$0xff]  ;;  %v595_v47 = vld [vmem:[#allocation5 + $0x1050] sm:$0xff] }
  0x73   :  { %v579_v48 = vld [vmem:[#allocation5 + $0xfd0] sm:$0xff]  ;;  %v1523_v49 = vpack.c.bf16 %v598_v42, %v580_v41  ;;  %v597_v50 = vld [vmem:[#allocation5 + $0x1060] sm:$0xff]  ;;  %v614_v51 = vld [vmem:[#allocation5 + $0x10e8] sm:$0xff]  ;;  %v1461_v55 = vpack.c.bf16 %v595_v47, %v577_v46 }
  0x74   :  { %1442 = vmatpush1.bf16.msra.mxu0 %v1441_v58  ;;  %v632_v52 = vld [vmem:[#allocation5 + $0x1178] sm:$0xff]  ;;  %v634_v54 = vld [vmem:[#allocation5 + $0x1188] sm:$0xff]  ;;  %v1525_v56 = vpack.c.bf16 %v597_v50, %v579_v48  ;;  %v613_v58 = vld [vmem:[#allocation5 + $0x10e0] sm:$0xff] }
  0x75   :  { %1506 = vmatpush1.bf16.msra.mxu1 %v1505_v59  ;;  %1444 = vmatprep.subr.bf16.mxu0 %v1443_v60  ;;  %v616_v53 = vld [vmem:[#allocation5 + $0x10f8] sm:$0xff]  ;;  %v1463_v57 = vpack.c.bf16 %v632_v52, %v614_v51  ;;  %v631_v59 = vld [vmem:[#allocation5 + $0x1170] sm:$0xff]  ;;  %v633_v62 = vld [vmem:[#allocation5 + $0x1180] sm:$0xff] }
  0x76   :  { %1508 = vmatprep.subr.bf16.mxu1 %v1507_v0  ;;  %v615_v60 = vld [vmem:[#allocation5 + $0x10f0] sm:$0xff]  ;;  %v1527_v61 = vpack.c.bf16 %v634_v54, %v616_v53  ;;  %v78_v63 = vld [vmem:[#allocation5 + $0x28] sm:$0xff]  ;;  %v96_v0 = vld [vmem:[#allocation5 + $0xb8] sm:$0xff]  ;;  %v1465_v3 = vpack.c.bf16 %v631_v59, %v613_v58 }
  0x77   :  { %v80_v1 = vld [vmem:[#allocation5 + $0x38] sm:$0xff]  ;;  %v98_v2 = vld [vmem:[#allocation5 + $0xc8] sm:$0xff]  ;;  %v1529_v4 = vpack.c.bf16 %v633_v62, %v615_v60  ;;  %v1531_v5 = vpack.c.bf16 %v96_v0, %v78_v63  ;;  %v95_v7 = vld [vmem:[#allocation5 + $0xb0] sm:$0xff] }
  0x78   :  { %1446 = vmatpush1.bf16.msra.mxu0 %v1445_v6  ;;  %v77_v6 = vld [vmem:[#allocation5 + $0x20] sm:$0xff]  ;;  %v114_v11 = vld [vmem:[#allocation5 + $0x148] sm:$0xff]  ;;  %v132_v12 = vld [vmem:[#allocation5 + $0x1d8] sm:$0xff] }
  0x79   :  { %1510 = vmatpush1.bf16.msra.mxu1 %v1509_v8  ;;  %1448 = vmatprep.subr.bf16.mxu0 %v1447_v9  ;;  %v79_v8 = vld [vmem:[#allocation5 + $0x30] sm:$0xff]  ;;  %v1595_v9 = vpack.c.bf16 %v98_v2, %v80_v1  ;;  %v97_v10 = vld [vmem:[#allocation5 + $0xc0] sm:$0xff]  ;;  %v134_v14 = vld [vmem:[#allocation5 + $0x1e8] sm:$0xff]  ;;  %v1533_v17 = vpack.c.bf16 %v95_v7, %v77_v6 }
  0x7a   :  { %1512 = vmatprep.subr.bf16.mxu1 %v1511_v13  ;;  %v116_v13 = vld [vmem:[#allocation5 + $0x158] sm:$0xff]  ;;  %v2219_v15 = vld [vmem:[#allocation2] sm:$0xff]  ;;  %v1597_v18 = vpack.c.bf16 %v97_v10, %v79_v8  ;;  %v133_v24 = vld [vmem:[#allocation5 + $0x1e0] sm:$0xff] }
  0x7b   :  { %v115_v22 = vld [vmem:[#allocation5 + $0x150] sm:$0xff]  ;;  %v1599_v23 = vpack.c.bf16 %v134_v14, %v116_v13  ;;  %v168_v26 = vld [vmem:[#allocation5 + $0x2f8] sm:$0xff]  ;;  %v170_v28 = vld [vmem:[#allocation5 + $0x308] sm:$0xff] }
  0x7c   :  { %1450 = vmatpush1.bf16.msra.mxu0 %v1449_v19  ;;  %v1535_v19 = vpack.c.bf16 %v132_v12, %v114_v11  ;;  %v152_v27 = vld [vmem:[#allocation5 + $0x278] sm:$0xff]  ;;  %v1601_v30 = vpack.c.bf16 %v133_v24, %v115_v22  ;;  %v151_v34 = vld [vmem:[#allocation5 + $0x270] sm:$0xff]  ;;  %v169_v36 = vld [vmem:[#allocation5 + $0x300] sm:$0xff] }
  0x7d   :  { %1514 = vmatpush1.bf16.msra.mxu1 %v1513_v20  ;;  %1452 = vmatprep.subr.bf16.mxu0 %v1451_v21  ;;  %v113_v20 = vld [vmem:[#allocation5 + $0x140] sm:$0xff]  ;;  %v131_v21 = vld [vmem:[#allocation5 + $0x1d0] sm:$0xff]  ;;  %v1603_v35 = vpack.c.bf16 %v170_v28, %v152_v27  ;;  %v204_v38 = vld [vmem:[#allocation5 + $0x418] sm:$0xff]  ;;  %v1605_v42 = vpack.c.bf16 %v169_v36, %v151_v34 }
  0x7e   :  { %1516 = vmatprep.subr.bf16.mxu1 %v1515_v25  ;;  %v150_v25 = vld [vmem:[#allocation5 + $0x268] sm:$0xff]  ;;  %v1537_v29 = vpack.c.bf16 %v131_v21, %v113_v20  ;;  %v188_v39 = vld [vmem:[#allocation5 + $0x398] sm:$0xff]  ;;  %v187_v46 = vld [vmem:[#allocation5 + $0x390] sm:$0xff] }
  0x7f   :  { %v206_v40 = vld [vmem:[#allocation5 + $0x428] sm:$0xff]  ;;  %v205_v48 = vld [vmem:[#allocation5 + $0x420] sm:$0xff]  ;;  %v240_v50 = vld [vmem:[#allocation5 + $0x538] sm:$0xff] }
  0x80   :  { %1454 = vmatpush1.bf16.msra.mxu0 %v1453_v31  ;;  %v1539_v31 = vpack.c.bf16 %v168_v26, %v150_v25  ;;  %v1607_v47 = vpack.c.bf16 %v206_v40, %v188_v39  ;;  %v224_v51 = vld [vmem:[#allocation5 + $0x4b8] sm:$0xff]  ;;  %v242_v52 = vld [vmem:[#allocation5 + $0x548] sm:$0xff]  ;;  %v1609_v54 = vpack.c.bf16 %v205_v48, %v187_v46  ;;  %v223_v58 = vld [vmem:[#allocation5 + $0x4b0] sm:$0xff] }
  0x81   :  { %1518 = vmatpush1.bf16.msra.mxu1 %v1517_v32  ;;  %1456 = vmatprep.subr.bf16.mxu0 %v1455_v33  ;;  %v149_v32 = vld [vmem:[#allocation5 + $0x260] sm:$0xff]  ;;  %v167_v33 = vld [vmem:[#allocation5 + $0x2f0] sm:$0xff]  ;;  %v1611_v59 = vpack.c.bf16 %v242_v52, %v224_v51  ;;  %v276_v62 = vld [vmem:[#allocation5 + $0x658] sm:$0xff] }
  0x82   :  { %1520 = vmatprep.subr.bf16.mxu1 %v1519_v37  ;;  %v186_v37 = vld [vmem:[#allocation5 + $0x388] sm:$0xff]  ;;  %v1541_v41 = vpack.c.bf16 %v167_v33, %v149_v32  ;;  %v241_v60 = vld [vmem:[#allocation5 + $0x540] sm:$0xff]  ;;  %v260_v63 = vld [vmem:[#allocation5 + $0x5d8] sm:$0xff] }
  0x83   :  { %v278_v0 = vld [vmem:[#allocation5 + $0x668] sm:$0xff]  ;;  %v1613_v2 = vpack.c.bf16 %v241_v60, %v223_v58  ;;  %v259_v6 = vld [vmem:[#allocation5 + $0x5d0] sm:$0xff]  ;;  %v277_v8 = vld [vmem:[#allocation5 + $0x660] sm:$0xff] }
  0x84   :  { %1458 = vmatpush1.bf16.msra.mxu0 %v1457_v43  ;;  %v1543_v43 = vpack.c.bf16 %v204_v38, %v186_v37  ;;  %v1615_v7 = vpack.c.bf16 %v278_v0, %v260_v63  ;;  %v312_v10 = vld [vmem:[#allocation5 + $0x778] sm:$0xff]  ;;  %v314_v12 = vld [vmem:[#allocation5 + $0x788] sm:$0xff]  ;;  %v1617_v14 = vpack.c.bf16 %v277_v8, %v259_v6  ;;  %v295_v20 = vld [vmem:[#allocation5 + $0x6f0] sm:$0xff] }
  0x85   :  { %1522 = vmatpush1.bf16.msra.mxu1 %v1521_v44  ;;  %1460 = vmatprep.subr.bf16.mxu0 %v1459_v45  ;;  %v185_v44 = vld [vmem:[#allocation5 + $0x380] sm:$0xff]  ;;  %v203_v45 = vld [vmem:[#allocation5 + $0x410] sm:$0xff]  ;;  %v296_v11 = vld [vmem:[#allocation5 + $0x6f8] sm:$0xff] }
  0x86   :  { %1524 = vmatprep.subr.bf16.mxu1 %v1523_v49  ;;  %v222_v49 = vld [vmem:[#allocation5 + $0x4a8] sm:$0xff]  ;;  %v1545_v53 = vpack.c.bf16 %v203_v45, %v185_v44  ;;  %v1619_v21 = vpack.c.bf16 %v314_v12, %v296_v11  ;;  %v313_v22 = vld [vmem:[#allocation5 + $0x780] sm:$0xff]  ;;  %v348_v24 = vld [vmem:[#allocation5 + $0x898] sm:$0xff] }
  0x87   :  { %v332_v25 = vld [vmem:[#allocation5 + $0x818] sm:$0xff]  ;;  %v350_v26 = vld [vmem:[#allocation5 + $0x8a8] sm:$0xff]  ;;  %v1621_v28 = vpack.c.bf16 %v313_v22, %v295_v20  ;;  %v331_v32 = vld [vmem:[#allocation5 + $0x810] sm:$0xff] }
  0x88   :  { %1462 = vmatpush1.bf16.msra.mxu0 %v1461_v55  ;;  %v1547_v55 = vpack.c.bf16 %v240_v50, %v222_v49  ;;  %v1623_v33 = vpack.c.bf16 %v350_v26, %v332_v25  ;;  %v349_v34 = vld [vmem:[#allocation5 + $0x8a0] sm:$0xff]  ;;  %v384_v36 = vld [vmem:[#allocation5 + $0x9b8] sm:$0xff]  ;;  %v386_v38 = vld [vmem:[#allocation5 + $0x9c8] sm:$0xff] }
  0x89   :  { %1526 = vmatpush1.bf16.msra.mxu1 %v1525_v56  ;;  %1464 = vmatprep.subr.bf16.mxu0 %v1463_v57  ;;  %v221_v56 = vld [vmem:[#allocation5 + $0x4a0] sm:$0xff]  ;;  %v239_v57 = vld [vmem:[#allocation5 + $0x530] sm:$0xff]  ;;  %v368_v37 = vld [vmem:[#allocation5 + $0x938] sm:$0xff]  ;;  %v1625_v40 = vpack.c.bf16 %v349_v34, %v331_v32 }
  0x8a   :  { %1528 = vmatprep.subr.bf16.mxu1 %v1527_v61  ;;  %v258_v61 = vld [vmem:[#allocation5 + $0x5c8] sm:$0xff]  ;;  %v1549_v1 = vpack.c.bf16 %v239_v57, %v221_v56  ;;  %v367_v44 = vld [vmem:[#allocation5 + $0x930] sm:$0xff]  ;;  %v1627_v45 = vpack.c.bf16 %v386_v38, %v368_v37  ;;  %v385_v46 = vld [vmem:[#allocation5 + $0x9c0] sm:$0xff] }
  0x8b   :  { %v420_v48 = vld [vmem:[#allocation5 + $0xad8] sm:$0xff]  ;;  %v422_v50 = vld [vmem:[#allocation5 + $0xae8] sm:$0xff]  ;;  %v1629_v52 = vpack.c.bf16 %v385_v46, %v367_v44  ;;  %v403_v56 = vld [vmem:[#allocation5 + $0xa50] sm:$0xff] }
  0x8c   :  { %1466 = vmatpush1.bf16.msra.mxu0 %v1465_v3  ;;  %v1551_v3 = vpack.c.bf16 %v276_v62, %v258_v61  ;;  %v404_v49 = vld [vmem:[#allocation5 + $0xa58] sm:$0xff]  ;;  %v421_v58 = vld [vmem:[#allocation5 + $0xae0] sm:$0xff]  ;;  %v458_v62 = vld [vmem:[#allocation5 + $0xc08] sm:$0xff] }
  0x8d   :  { %1530 = vmatpush1.bf16.msra.mxu1 %v1529_v4  ;;  %1532 = vmatprep.subr.bf16.mxu0 %v1531_v5  ;;  %v257_v4 = vld [vmem:[#allocation5 + $0x5c0] sm:$0xff]  ;;  %v275_v5 = vld [vmem:[#allocation5 + $0x650] sm:$0xff]  ;;  %v1631_v57 = vpack.c.bf16 %v422_v50, %v404_v49  ;;  %v456_v60 = vld [vmem:[#allocation5 + $0xbf8] sm:$0xff]  ;;  %v1633_v0 = vpack.c.bf16 %v421_v58, %v403_v56 }
  0x8e   :  { %1596 = vmatprep.subr.bf16.mxu1 %v1595_v9  ;;  %v294_v9 = vld [vmem:[#allocation5 + $0x6e8] sm:$0xff]  ;;  %v1553_v13 = vpack.c.bf16 %v275_v5, %v257_v4  ;;  %v440_v61 = vld [vmem:[#allocation5 + $0xb78] sm:$0xff]  ;;  %v439_v4 = vld [vmem:[#allocation5 + $0xb70] sm:$0xff] }
  0x8f   :  { %714 = vmatmul.mubr.f32.vlgmr.msra.gmra.mrb[0].mxu0 %v2219_v15  ;;  %v1635_v5 = vpack.c.bf16 %v458_v62, %v440_v61  ;;  %v457_v6 = vld [vmem:[#allocation5 + $0xc00] sm:$0xff]  ;;  %v492_v8 = vld [vmem:[#allocation5 + $0xd18] sm:$0xff] }
  0x90   :  { %785 = vmatmul.mubr.f32.vlgmr.msra.gmra.mrb[0].mxu1 %v2219_v15  ;;  %1534 = vmatpush1.bf16.msra.mxu0 %v1533_v17  ;;  %v1555_v17 = vpack.c.bf16 %v312_v10, %v294_v9  ;;  %v476_v9 = vld [vmem:[#allocation5 + $0xc98] sm:$0xff]  ;;  %v494_v10 = vld [vmem:[#allocation5 + $0xd28] sm:$0xff]  ;;  %v1637_v12 = vpack.c.bf16 %v457_v6, %v439_v4  ;;  %v493_v20 = vld [vmem:[#allocation5 + $0xd20] sm:$0xff] }
  0x91   :  { %1598 = vmatpush1.bf16.msra.mxu1 %v1597_v18  ;;  %1536 = vmatprep.subr.bf16.mxu0 %v1535_v19  ;;  %v293_v18 = vld [vmem:[#allocation5 + $0x6e0] sm:$0xff]  ;;  %v311_v19 = vld [vmem:[#allocation5 + $0x770] sm:$0xff]  ;;  %v528_v22 = vld [vmem:[#allocation5 + $0xe38] sm:$0xff] }
  0x92   :  { %1600 = vmatprep.subr.bf16.mxu1 %v1599_v23  ;;  %855 = vmatprep.mubr.f32.mxu0 %v2215_v16  ;;  %v330_v23 = vld [vmem:[#allocation5 + $0x808] sm:$0xff]  ;;  %v1557_v27 = vpack.c.bf16 %v311_v19, %v293_v18  ;;  %v475_v18 = vld [vmem:[#allocation5 + $0xc90] sm:$0xff]  ;;  %v1639_v19 = vpack.c.bf16 %v494_v10, %v476_v9  ;;  %v529_v32 = vld [vmem:[#allocation5 + $0xe40] sm:$0xff] }
  0x93   :  { %926 = vmatprep.mubr.f32.mxu1 %v2215_v16  ;;  %v1641_v26 = vpack.c.bf16 %v493_v20, %v475_v18  ;;  %v564_v34 = vld [vmem:[#allocation5 + $0xf58] sm:$0xff]  ;;  %v565_v44 = vld [vmem:[#allocation5 + $0xf60] sm:$0xff] }
  0x94   :  { %1538 = vmatpush1.bf16.msra.mxu0 %v1537_v29  ;;  %v1559_v29 = vpack.c.bf16 %v348_v24, %v330_v23  ;;  %v512_v23 = vld [vmem:[#allocation5 + $0xdb8] sm:$0xff]  ;;  %v530_v24 = vld [vmem:[#allocation5 + $0xe48] sm:$0xff]  ;;  %v601_v56 = vld [vmem:[#allocation5 + $0x1080] sm:$0xff] }
  0x95   :  { %1602 = vmatpush1.bf16.msra.mxu1 %v1601_v30  ;;  %1540 = vmatprep.subr.bf16.mxu0 %v1539_v31  ;;  %v329_v30 = vld [vmem:[#allocation5 + $0x800] sm:$0xff]  ;;  %v347_v31 = vld [vmem:[#allocation5 + $0x890] sm:$0xff]  ;;  %v600_v46 = vld [vmem:[#allocation5 + $0x1078] sm:$0xff] }
  0x96   :  { %1604 = vmatprep.subr.bf16.mxu1 %v1603_v35  ;;  %v366_v35 = vld [vmem:[#allocation5 + $0x928] sm:$0xff]  ;;  %v1561_v39 = vpack.c.bf16 %v347_v31, %v329_v30  ;;  %v511_v30 = vld [vmem:[#allocation5 + $0xdb0] sm:$0xff]  ;;  %v1643_v31 = vpack.c.bf16 %v530_v24, %v512_v23  ;;  %v636_v58 = vld [vmem:[#allocation5 + $0x1198] sm:$0xff] }
  0x97   :  { %v1645_v38 = vpack.c.bf16 %v529_v32, %v511_v30  ;;  %v637_v4 = vld [vmem:[#allocation5 + $0x11a0] sm:$0xff]  ;;  %v100_v6 = vld [vmem:[#allocation5 + $0xd8] sm:$0xff] }
  0x98   :  { %1542 = vmatpush1.bf16.msra.mxu0 %v1541_v41  ;;  %v1563_v41 = vpack.c.bf16 %v384_v36, %v366_v35  ;;  %v548_v35 = vld [vmem:[#allocation5 + $0xed8] sm:$0xff]  ;;  %v566_v36 = vld [vmem:[#allocation5 + $0xf68] sm:$0xff]  ;;  %v101_v18 = vld [vmem:[#allocation5 + $0xe0] sm:$0xff] }
  0x99   :  { %1606 = vmatpush1.bf16.msra.mxu1 %v1605_v42  ;;  %1544 = vmatprep.subr.bf16.mxu0 %v1543_v43  ;;  %v365_v42 = vld [vmem:[#allocation5 + $0x920] sm:$0xff]  ;;  %v383_v43 = vld [vmem:[#allocation5 + $0x9b0] sm:$0xff]  ;;  %v136_v20 = vld [vmem:[#allocation5 + $0x1f8] sm:$0xff] }
  0x9a   :  { %1608 = vmatprep.subr.bf16.mxu1 %v1607_v47  ;;  %v402_v47 = vld [vmem:[#allocation5 + $0xa48] sm:$0xff]  ;;  %v1565_v51 = vpack.c.bf16 %v383_v43, %v365_v42  ;;  %v547_v42 = vld [vmem:[#allocation5 + $0xed0] sm:$0xff]  ;;  %v1647_v43 = vpack.c.bf16 %v566_v36, %v548_v35  ;;  %v137_v30 = vld [vmem:[#allocation5 + $0x200] sm:$0xff] }
  0x9b   :  { %v1649_v50 = vpack.c.bf16 %v565_v44, %v547_v42  ;;  %v172_v32 = vld [vmem:[#allocation5 + $0x318] sm:$0xff]  ;;  %v173_v42 = vld [vmem:[#allocation5 + $0x320] sm:$0xff] }
  0x9c   :  { %1546 = vmatpush1.bf16.msra.mxu0 %v1545_v53  ;;  %v1567_v53 = vpack.c.bf16 %v420_v48, %v402_v47  ;;  %v584_v47 = vld [vmem:[#allocation5 + $0xff8] sm:$0xff]  ;;  %v602_v48 = vld [vmem:[#allocation5 + $0x1088] sm:$0xff] }
  0x9d   :  { %1610 = vmatpush1.bf16.msra.mxu1 %v1609_v54  ;;  %1548 = vmatprep.subr.bf16.mxu0 %v1547_v55  ;;  %v401_v54 = vld [vmem:[#allocation5 + $0xa40] sm:$0xff]  ;;  %v419_v55 = vld [vmem:[#allocation5 + $0xad0] sm:$0xff]  ;;  %v208_v44 = vld [vmem:[#allocation5 + $0x438] sm:$0xff] }
  0x9e   :  { %1612 = vmatprep.subr.bf16.mxu1 %v1611_v59  ;;  %v438_v59 = vld [vmem:[#allocation5 + $0xb68] sm:$0xff]  ;;  %v1569_v63 = vpack.c.bf16 %v419_v55, %v401_v54  ;;  %v583_v54 = vld [vmem:[#allocation5 + $0xff0] sm:$0xff]  ;;  %v1651_v55 = vpack.c.bf16 %v602_v48, %v584_v47 }
  0x9f   :  { %v1653_v62 = vpack.c.bf16 %v601_v56, %v583_v54  ;;  %v226_v54 = vld [vmem:[#allocation5 + $0x4c8] sm:$0xff]  ;;  %v228_v56 = vld [vmem:[#allocation5 + $0x4d8] sm:$0xff] }
  0xa0   :  { %1550 = vmatpush1.bf16.msra.mxu0 %v1549_v1  ;;  %v1571_v1 = vpack.c.bf16 %v456_v60, %v438_v59  ;;  %v620_v59 = vld [vmem:[#allocation5 + $0x1118] sm:$0xff]  ;;  %v638_v60 = vld [vmem:[#allocation5 + $0x11a8] sm:$0xff] }
  0xa1   :  { %1614 = vmatpush1.bf16.msra.mxu1 %v1613_v2  ;;  %1552 = vmatprep.subr.bf16.mxu0 %v1551_v3  ;;  %v437_v2 = vld [vmem:[#allocation5 + $0xb60] sm:$0xff]  ;;  %v455_v3 = vld [vmem:[#allocation5 + $0xbf0] sm:$0xff] }
  0xa2   :  { %1616 = vmatprep.subr.bf16.mxu1 %v1615_v7  ;;  %v474_v7 = vld [vmem:[#allocation5 + $0xc88] sm:$0xff]  ;;  %v1573_v11 = vpack.c.bf16 %v455_v3, %v437_v2  ;;  %v619_v2 = vld [vmem:[#allocation5 + $0x1110] sm:$0xff]  ;;  %v1655_v3 = vpack.c.bf16 %v638_v60, %v620_v59  ;;  %v225_v60 = vld [vmem:[#allocation5 + $0x4c0] sm:$0xff] }
  0xa3   :  { %v1657_v10 = vpack.c.bf16 %v637_v4, %v619_v2  ;;  %v280_v2 = vld [vmem:[#allocation5 + $0x678] sm:$0xff]  ;;  %v282_v4 = vld [vmem:[#allocation5 + $0x688] sm:$0xff] }
  0xa4   :  { %1554 = vmatpush1.bf16.msra.mxu0 %v1553_v13  ;;  %v1575_v13 = vpack.c.bf16 %v492_v8, %v474_v7  ;;  %v84_v7 = vld [vmem:[#allocation5 + $0x58] sm:$0xff]  ;;  %v102_v8 = vld [vmem:[#allocation5 + $0xe8] sm:$0xff] }
  0xa5   :  { %1618 = vmatpush1.bf16.msra.mxu1 %v1617_v14  ;;  %1556 = vmatprep.subr.bf16.mxu0 %v1555_v17  ;;  %v473_v14 = vld [vmem:[#allocation5 + $0xc80] sm:$0xff]  ;;  %v491_v17 = vld [vmem:[#allocation5 + $0xd10] sm:$0xff] }
  0xa6   :  { %1620 = vmatprep.subr.bf16.mxu1 %v1619_v21  ;;  %v510_v21 = vld [vmem:[#allocation5 + $0xda8] sm:$0xff]  ;;  %v1577_v25 = vpack.c.bf16 %v491_v17, %v473_v14  ;;  %v83_v14 = vld [vmem:[#allocation5 + $0x50] sm:$0xff]  ;;  %v1723_v17 = vpack.c.bf16 %v102_v8, %v84_v7  ;;  %v261_v8 = vld [vmem:[#allocation5 + $0x5e0] sm:$0xff] }
  0xa7   :  { %v1725_v24 = vpack.c.bf16 %v101_v18, %v83_v14  ;;  %v316_v14 = vld [vmem:[#allocation5 + $0x798] sm:$0xff]  ;;  %v318_v18 = vld [vmem:[#allocation5 + $0x7a8] sm:$0xff] }
  0xa8   :  { %1558 = vmatpush1.bf16.msra.mxu0 %v1557_v27  ;;  %v1579_v27 = vpack.c.bf16 %v528_v22, %v510_v21  ;;  %v120_v21 = vld [vmem:[#allocation5 + $0x178] sm:$0xff]  ;;  %v138_v22 = vld [vmem:[#allocation5 + $0x208] sm:$0xff] }
  0xa9   :  { %1622 = vmatpush1.bf16.msra.mxu1 %v1621_v28  ;;  %1560 = vmatprep.subr.bf16.mxu0 %v1559_v29  ;;  %v509_v28 = vld [vmem:[#allocation5 + $0xda0] sm:$0xff]  ;;  %v527_v29 = vld [vmem:[#allocation5 + $0xe30] sm:$0xff] }
  0xaa   :  { %1624 = vmatprep.subr.bf16.mxu1 %v1623_v33  ;;  %v546_v33 = vld [vmem:[#allocation5 + $0xec8] sm:$0xff]  ;;  %v1581_v37 = vpack.c.bf16 %v527_v29, %v509_v28  ;;  %v119_v28 = vld [vmem:[#allocation5 + $0x170] sm:$0xff]  ;;  %v1727_v29 = vpack.c.bf16 %v138_v22, %v120_v21  ;;  %v297_v22 = vld [vmem:[#allocation5 + $0x700] sm:$0xff] }
  0xab   :  { %v1729_v36 = vpack.c.bf16 %v137_v30, %v119_v28  ;;  %v352_v28 = vld [vmem:[#allocation5 + $0x8b8] sm:$0xff]  ;;  %v354_v30 = vld [vmem:[#allocation5 + $0x8c8] sm:$0xff] }
  0xac   :  { %1562 = vmatpush1.bf16.msra.mxu0 %v1561_v39  ;;  %v1583_v39 = vpack.c.bf16 %v564_v34, %v546_v33  ;;  %v156_v33 = vld [vmem:[#allocation5 + $0x298] sm:$0xff]  ;;  %v174_v34 = vld [vmem:[#allocation5 + $0x328] sm:$0xff] }
  0xad   :  { %1626 = vmatpush1.bf16.msra.mxu1 %v1625_v40  ;;  %1564 = vmatprep.subr.bf16.mxu0 %v1563_v41  ;;  %v545_v40 = vld [vmem:[#allocation5 + $0xec0] sm:$0xff]  ;;  %v563_v41 = vld [vmem:[#allocation5 + $0xf50] sm:$0xff] }
  0xae   :  { %1628 = vmatprep.subr.bf16.mxu1 %v1627_v45  ;;  %v582_v45 = vld [vmem:[#allocation5 + $0xfe8] sm:$0xff]  ;;  %v1585_v49 = vpack.c.bf16 %v563_v41, %v545_v40  ;;  %v155_v40 = vld [vmem:[#allocation5 + $0x290] sm:$0xff]  ;;  %v1731_v41 = vpack.c.bf16 %v174_v34, %v156_v33  ;;  %v333_v34 = vld [vmem:[#allocation5 + $0x820] sm:$0xff] }
  0xaf   :  { %v1733_v47 = vpack.c.bf16 %v173_v42, %v155_v40  ;;  %v388_v40 = vld [vmem:[#allocation5 + $0x9d8] sm:$0xff]  ;;  %v390_v42 = vld [vmem:[#allocation5 + $0x9e8] sm:$0xff] }
  0xb0   :  { %1566 = vmatpush1.bf16.msra.mxu0 %v1565_v51  ;;  %v1587_v51 = vpack.c.bf16 %v600_v46, %v582_v45  ;;  %v192_v45 = vld [vmem:[#allocation5 + $0x3b8] sm:$0xff]  ;;  %v210_v46 = vld [vmem:[#allocation5 + $0x448] sm:$0xff] }
  0xb1   :  { %1630 = vmatpush1.bf16.msra.mxu1 %v1629_v52  ;;  %1568 = vmatprep.subr.bf16.mxu0 %v1567_v53  ;;  %v581_v52 = vld [vmem:[#allocation5 + $0xfe0] sm:$0xff]  ;;  %v599_v53 = vld [vmem:[#allocation5 + $0x1070] sm:$0xff] }
  0xb2   :  { %1632 = vmatprep.subr.bf16.mxu1 %v1631_v57  ;;  %v618_v57 = vld [vmem:[#allocation5 + $0x1108] sm:$0xff]  ;;  %v1589_v61 = vpack.c.bf16 %v599_v53, %v581_v52  ;;  %v1735_v52 = vpack.c.bf16 %v210_v46, %v192_v45  ;;  %v209_v53 = vld [vmem:[#allocation5 + $0x440] sm:$0xff] }
  0xb3   :  { %v369_v46 = vld [vmem:[#allocation5 + $0x940] sm:$0xff] }
  0xb4   :  { %1570 = vmatpush1.bf16.msra.mxu0 %v1569_v63  ;;  %v1591_v63 = vpack.c.bf16 %v636_v58, %v618_v57  ;;  %v246_v57 = vld [vmem:[#allocation5 + $0x568] sm:$0xff] }
  0xb5   :  { %1634 = vmatpush1.bf16.msra.mxu1 %v1633_v0  ;;  %1572 = vmatprep.subr.bf16.mxu0 %v1571_v1  ;;  %v617_v0 = vld [vmem:[#allocation5 + $0x1100] sm:$0xff]  ;;  %v635_v1 = vld [vmem:[#allocation5 + $0x1190] sm:$0xff] }
  0xb6   :  { %1636 = vmatprep.subr.bf16.mxu1 %v1635_v5  ;;  %v82_v5 = vld [vmem:[#allocation5 + $0x48] sm:$0xff]  ;;  %v1593_v9 = vpack.c.bf16 %v635_v1, %v617_v0  ;;  %v245_v0 = vld [vmem:[#allocation5 + $0x560] sm:$0xff] }
  0xb7   :  { %v262_v1 = vld [vmem:[#allocation5 + $0x5e8] sm:$0xff] }
  0xb8   :  { %1574 = vmatpush1.bf16.msra.mxu0 %v1573_v11  ;;  %v1659_v11 = vpack.c.bf16 %v100_v6, %v82_v5  ;;  %v1679_v7 = vpack.c.bf16 %v280_v2, %v262_v1 }
  0xb9   :  { %1638 = vmatpush1.bf16.msra.mxu1 %v1637_v12  ;;  %1576 = vmatprep.subr.bf16.mxu0 %v1575_v13  ;;  %v81_v12 = vld [vmem:[#allocation5 + $0x40] sm:$0xff]  ;;  %v99_v13 = vld [vmem:[#allocation5 + $0xd0] sm:$0xff] }
  0xba   :  { %1640 = vmatprep.subr.bf16.mxu1 %v1639_v19  ;;  %v118_v19 = vld [vmem:[#allocation5 + $0x168] sm:$0xff]  ;;  %v1661_v23 = vpack.c.bf16 %v99_v13, %v81_v12  ;;  %v281_v12 = vld [vmem:[#allocation5 + $0x680] sm:$0xff] }
  0xbb   :  { %v298_v13 = vld [vmem:[#allocation5 + $0x708] sm:$0xff] }
  0xbc   :  { %1578 = vmatpush1.bf16.msra.mxu0 %v1577_v25  ;;  %v1663_v25 = vpack.c.bf16 %v136_v20, %v118_v19  ;;  %v1683_v21 = vpack.c.bf16 %v316_v14, %v298_v13 }
  0xbd   :  { %1642 = vmatpush1.bf16.msra.mxu1 %v1641_v26  ;;  %1580 = vmatprep.subr.bf16.mxu0 %v1579_v27  ;;  %v117_v26 = vld [vmem:[#allocation5 + $0x160] sm:$0xff]  ;;  %v135_v27 = vld [vmem:[#allocation5 + $0x1f0] sm:$0xff] }
  0xbe   :  { %1644 = vmatprep.subr.bf16.mxu1 %v1643_v31  ;;  %v154_v31 = vld [vmem:[#allocation5 + $0x288] sm:$0xff]  ;;  %v1665_v35 = vpack.c.bf16 %v135_v27, %v117_v26  ;;  %v317_v26 = vld [vmem:[#allocation5 + $0x7a0] sm:$0xff] }
  0xbf   :  { %v334_v27 = vld [vmem:[#allocation5 + $0x828] sm:$0xff] }
  0xc0   :  { %1582 = vmatpush1.bf16.msra.mxu0 %v1581_v37  ;;  %v1667_v37 = vpack.c.bf16 %v172_v32, %v154_v31  ;;  %v1687_v33 = vpack.c.bf16 %v352_v28, %v334_v27 }
  0xc1   :  { %1646 = vmatpush1.bf16.msra.mxu1 %v1645_v38  ;;  %1584 = vmatprep.subr.bf16.mxu0 %v1583_v39  ;;  %v153_v38 = vld [vmem:[#allocation5 + $0x280] sm:$0xff]  ;;  %v171_v39 = vld [vmem:[#allocation5 + $0x310] sm:$0xff] }
  0xc2   :  { %1648 = vmatprep.subr.bf16.mxu1 %v1647_v43  ;;  %v190_v43 = vld [vmem:[#allocation5 + $0x3a8] sm:$0xff] }
  0xc3   :  { %v1671_v48 = vpack.c.bf16 %v208_v44, %v190_v43 }
  0xc4   :  { %1586 = vmatpush1.bf16.msra.mxu0 %v1585_v49  ;;  %v189_v49 = vld [vmem:[#allocation5 + $0x3a0] sm:$0xff] }
  0xc5   :  { %1650 = vmatpush1.bf16.msra.mxu1 %v1649_v50  ;;  %1588 = vmatprep.subr.bf16.mxu0 %v1587_v51  ;;  %v207_v50 = vld [vmem:[#allocation5 + $0x430] sm:$0xff] }
  0xc6   :  { %1652 = vmatprep.subr.bf16.mxu1 %v1651_v55  ;;  %v191_v51 = vld [vmem:[#allocation5 + $0x3b0] sm:$0xff]  ;;  %v244_v55 = vld [vmem:[#allocation5 + $0x558] sm:$0xff]  ;;  %v1673_v58 = vpack.c.bf16 %v207_v50, %v189_v49  ;;  %v389_v49 = vld [vmem:[#allocation5 + $0x9e0] sm:$0xff] }
  0xc7   :  { %v1675_v59 = vpack.c.bf16 %v244_v55, %v226_v54  ;;  %v406_v50 = vld [vmem:[#allocation5 + $0xa68] sm:$0xff] }
  0xc8   :  { %1590 = vmatpush1.bf16.msra.mxu0 %v1589_v61  ;;  %v243_v61 = vld [vmem:[#allocation5 + $0x550] sm:$0xff] }
  0xc9   :  { %1654 = vmatpush1.bf16.msra.mxu1 %v1653_v62  ;;  %1592 = vmatprep.subr.bf16.mxu0 %v1591_v63  ;;  %v227_v62 = vld [vmem:[#allocation5 + $0x4d0] sm:$0xff]  ;;  %v1739_v63 = vpack.c.bf16 %v246_v57, %v228_v56  ;;  %v1677_v5 = vpack.c.bf16 %v243_v61, %v225_v60  ;;  %v405_v57 = vld [vmem:[#allocation5 + $0xa60] sm:$0xff]  ;;  %v442_v61 = vld [vmem:[#allocation5 + $0xb88] sm:$0xff] }
  0xca   :  { %1656 = vmatprep.subr.bf16.mxu1 %v1655_v3  ;;  %v264_v3 = vld [vmem:[#allocation5 + $0x5f8] sm:$0xff]  ;;  %v1741_v6 = vpack.c.bf16 %v245_v0, %v227_v62  ;;  %v425_v60 = vld [vmem:[#allocation5 + $0xb00] sm:$0xff]  ;;  %v462_v0 = vld [vmem:[#allocation5 + $0xc28] sm:$0xff] }
  0xcb   :  { %v460_v62 = vld [vmem:[#allocation5 + $0xc18] sm:$0xff] }
  0xcc   :  { %1594 = vmatpush1.bf16.msra.mxu0 %v1593_v9  ;;  %v279_v9 = vld [vmem:[#allocation5 + $0x670] sm:$0xff] }
  0xcd   :  { %1658 = vmatpush1.bf16.msra.mxu1 %v1657_v10  ;;  %1660 = vmatprep.subr.bf16.mxu0 %v1659_v11  ;;  %v263_v10 = vld [vmem:[#allocation5 + $0x5f0] sm:$0xff]  ;;  %v1743_v11 = vpack.c.bf16 %v282_v4, %v264_v3  ;;  %v1681_v19 = vpack.c.bf16 %v279_v9, %v261_v8  ;;  %v1699_v3 = vpack.c.bf16 %v460_v62, %v442_v61  ;;  %v441_v4 = vld [vmem:[#allocation5 + $0xb80] sm:$0xff]  ;;  %v478_v9 = vld [vmem:[#allocation5 + $0xca8] sm:$0xff] }
  0xce   :  { %1724 = vmatprep.subr.bf16.mxu1 %v1723_v17  ;;  %v300_v17 = vld [vmem:[#allocation5 + $0x718] sm:$0xff]  ;;  %v1745_v20 = vpack.c.bf16 %v281_v12, %v263_v10  ;;  %v461_v8 = vld [vmem:[#allocation5 + $0xc20] sm:$0xff]  ;;  %v498_v12 = vld [vmem:[#allocation5 + $0xd48] sm:$0xff] }
  0xcf   :  { %856 = vmatmul.mubr.f32.vlgmr.msra.gmra.mrb[2].mxu0 %v2219_v15  ;;  %v496_v10 = vld [vmem:[#allocation5 + $0xd38] sm:$0xff] }
  0xd0   :  { %927 = vmatmul.mubr.f32.vlgmr.msra.gmra.mrb[2].mxu1 %v2219_v15  ;;  %1662 = vmatpush1.bf16.msra.mxu0 %v1661_v23  ;;  %v1669_v15 = vpack.c.bf16 %v171_v39, %v153_v38  ;;  %v315_v23 = vld [vmem:[#allocation5 + $0x790] sm:$0xff]  ;;  %v353_v38 = vld [vmem:[#allocation5 + $0x8c0] sm:$0xff]  ;;  %v370_v39 = vld [vmem:[#allocation5 + $0x948] sm:$0xff] }
  0xd1   :  { %1726 = vmatpush1.bf16.msra.mxu1 %v1725_v24  ;;  %1664 = vmatprep.subr.bf16.mxu0 %v1663_v25  ;;  %v299_v24 = vld [vmem:[#allocation5 + $0x710] sm:$0xff]  ;;  %v1747_v25 = vpack.c.bf16 %v318_v18, %v300_v17  ;;  %v1685_v31 = vpack.c.bf16 %v315_v23, %v297_v22  ;;  %v1691_v45 = vpack.c.bf16 %v388_v40, %v370_v39  ;;  %v477_v18 = vld [vmem:[#allocation5 + $0xca0] sm:$0xff]  ;;  %v514_v23 = vld [vmem:[#allocation5 + $0xdc8] sm:$0xff] }
  0xd2   :  { %1728 = vmatprep.subr.bf16.mxu1 %v1727_v29  ;;  %997 = vmatprep.mubr.f32.mxu0 %v2215_v16  ;;  %v336_v29 = vld [vmem:[#allocation5 + $0x838] sm:$0xff]  ;;  %v1749_v32 = vpack.c.bf16 %v317_v26, %v299_v24  ;;  %v1703_v17 = vpack.c.bf16 %v496_v10, %v478_v9  ;;  %v497_v22 = vld [vmem:[#allocation5 + $0xd40] sm:$0xff]  ;;  %v534_v26 = vld [vmem:[#allocation5 + $0xe68] sm:$0xff] }
  0xd3   :  { %1068 = vmatprep.mubr.f32.mxu1 %v2215_v16  ;;  %v1737_v16 = vpack.c.bf16 %v209_v53, %v191_v51  ;;  %v424_v51 = vld [vmem:[#allocation5 + $0xaf8] sm:$0xff]  ;;  %v426_v53 = vld [vmem:[#allocation5 + $0xb08] sm:$0xff] }
  0xd4   :  { %1666 = vmatpush1.bf16.msra.mxu0 %v1665_v35  ;;  %v351_v35 = vld [vmem:[#allocation5 + $0x8b0] sm:$0xff]  ;;  %v1695_v56 = vpack.c.bf16 %v424_v51, %v406_v50  ;;  %v532_v24 = vld [vmem:[#allocation5 + $0xe58] sm:$0xff] }
  0xd5   :  { %1730 = vmatpush1.bf16.msra.mxu1 %v1729_v36  ;;  %1668 = vmatprep.subr.bf16.mxu0 %v1667_v37  ;;  %v335_v36 = vld [vmem:[#allocation5 + $0x830] sm:$0xff]  ;;  %v1751_v37 = vpack.c.bf16 %v354_v30, %v336_v29  ;;  %v1689_v43 = vpack.c.bf16 %v351_v35, %v333_v34  ;;  %v1707_v29 = vpack.c.bf16 %v532_v24, %v514_v23  ;;  %v513_v30 = vld [vmem:[#allocation5 + $0xdc0] sm:$0xff]  ;;  %v550_v35 = vld [vmem:[#allocation5 + $0xee8] sm:$0xff] }
  0xd6   :  { %1732 = vmatprep.subr.bf16.mxu1 %v1731_v41  ;;  %v372_v41 = vld [vmem:[#allocation5 + $0x958] sm:$0xff]  ;;  %v1753_v44 = vpack.c.bf16 %v353_v38, %v335_v36  ;;  %v533_v34 = vld [vmem:[#allocation5 + $0xe60] sm:$0xff]  ;;  %v570_v38 = vld [vmem:[#allocation5 + $0xf88] sm:$0xff] }
  0xd7   :  { %v568_v36 = vld [vmem:[#allocation5 + $0xf78] sm:$0xff] }
  0xd8   :  { %1670 = vmatpush1.bf16.msra.mxu0 %v1669_v15  ;;  %v387_v15 = vld [vmem:[#allocation5 + $0x9d0] sm:$0xff] }
  0xd9   :  { %1734 = vmatpush1.bf16.msra.mxu1 %v1733_v47  ;;  %1672 = vmatprep.subr.bf16.mxu0 %v1671_v48  ;;  %v371_v47 = vld [vmem:[#allocation5 + $0x950] sm:$0xff]  ;;  %v1755_v48 = vpack.c.bf16 %v390_v42, %v372_v41  ;;  %v1693_v54 = vpack.c.bf16 %v387_v15, %v369_v46  ;;  %v1711_v41 = vpack.c.bf16 %v568_v36, %v550_v35  ;;  %v549_v42 = vld [vmem:[#allocation5 + $0xee0] sm:$0xff]  ;;  %v586_v15 = vld [vmem:[#allocation5 + $0x1008] sm:$0xff] }
  0xda   :  { %1736 = vmatprep.subr.bf16.mxu1 %v1735_v52  ;;  %v408_v52 = vld [vmem:[#allocation5 + $0xa78] sm:$0xff]  ;;  %v1757_v55 = vpack.c.bf16 %v389_v49, %v371_v47  ;;  %v569_v46 = vld [vmem:[#allocation5 + $0xf80] sm:$0xff]  ;;  %v606_v49 = vld [vmem:[#allocation5 + $0x10a8] sm:$0xff] }
  0xdb   :  { %v604_v47 = vld [vmem:[#allocation5 + $0x1098] sm:$0xff]  ;;  %v178_v35 = vld [vmem:[#allocation5 + $0x348] sm:$0xff] }
  0xdc   :  { %1674 = vmatpush1.bf16.msra.mxu0 %v1673_v58  ;;  %v423_v58 = vld [vmem:[#allocation5 + $0xaf0] sm:$0xff] }
  0xdd   :  { %1738 = vmatpush1.bf16.msra.mxu1 %v1737_v16  ;;  %1676 = vmatprep.subr.bf16.mxu0 %v1675_v59  ;;  %v407_v16 = vld [vmem:[#allocation5 + $0xa70] sm:$0xff]  ;;  %v1759_v59 = vpack.c.bf16 %v426_v53, %v408_v52  ;;  %v1697_v1 = vpack.c.bf16 %v423_v58, %v405_v57  ;;  %v1715_v52 = vpack.c.bf16 %v604_v47, %v586_v15  ;;  %v585_v53 = vld [vmem:[#allocation5 + $0x1000] sm:$0xff]  ;;  %v622_v58 = vld [vmem:[#allocation5 + $0x1128] sm:$0xff] }
  0xde   :  { %1740 = vmatprep.subr.bf16.mxu1 %v1739_v63  ;;  %v444_v63 = vld [vmem:[#allocation5 + $0xb98] sm:$0xff]  ;;  %v1761_v2 = vpack.c.bf16 %v425_v60, %v407_v16  ;;  %v605_v57 = vld [vmem:[#allocation5 + $0x10a0] sm:$0xff]  ;;  %v642_v60 = vld [vmem:[#allocation5 + $0x11c8] sm:$0xff] }
  0xdf   :  { %v640_v16 = vld [vmem:[#allocation5 + $0x11b8] sm:$0xff]  ;;  %v214_v47 = vld [vmem:[#allocation5 + $0x468] sm:$0xff] }
  0xe0   :  { %1678 = vmatpush1.bf16.msra.mxu0 %v1677_v5  ;;  %v459_v5 = vld [vmem:[#allocation5 + $0xc10] sm:$0xff]  ;;  %v196_v15 = vld [vmem:[#allocation5 + $0x3d8] sm:$0xff] }
  0xe1   :  { %1742 = vmatpush1.bf16.msra.mxu1 %v1741_v6  ;;  %1680 = vmatprep.subr.bf16.mxu0 %v1679_v7  ;;  %v443_v6 = vld [vmem:[#allocation5 + $0xb90] sm:$0xff]  ;;  %v1763_v7 = vpack.c.bf16 %v462_v0, %v444_v63  ;;  %v1701_v13 = vpack.c.bf16 %v459_v5, %v441_v4  ;;  %v1719_v63 = vpack.c.bf16 %v640_v16, %v622_v58  ;;  %v621_v0 = vld [vmem:[#allocation5 + $0x1120] sm:$0xff]  ;;  %v86_v5 = vld [vmem:[#allocation5 + $0x68] sm:$0xff] }
  0xe2   :  { %1744 = vmatprep.subr.bf16.mxu1 %v1743_v11  ;;  %v480_v11 = vld [vmem:[#allocation5 + $0xcb8] sm:$0xff]  ;;  %v1765_v14 = vpack.c.bf16 %v461_v8, %v443_v6  ;;  %v641_v4 = vld [vmem:[#allocation5 + $0x11c0] sm:$0xff]  ;;  %v106_v8 = vld [vmem:[#allocation5 + $0x108] sm:$0xff] }
  0xe3   :  { %v104_v6 = vld [vmem:[#allocation5 + $0xf8] sm:$0xff]  ;;  %v250_v16 = vld [vmem:[#allocation5 + $0x588] sm:$0xff] }
  0xe4   :  { %1682 = vmatpush1.bf16.msra.mxu0 %v1681_v19  ;;  %v495_v19 = vld [vmem:[#allocation5 + $0xd30] sm:$0xff]  ;;  %v232_v58 = vld [vmem:[#allocation5 + $0x4f8] sm:$0xff] }
  0xe5   :  { %1746 = vmatpush1.bf16.msra.mxu1 %v1745_v20  ;;  %1684 = vmatprep.subr.bf16.mxu0 %v1683_v21  ;;  %v479_v20 = vld [vmem:[#allocation5 + $0xcb0] sm:$0xff]  ;;  %v1767_v21 = vpack.c.bf16 %v498_v12, %v480_v11  ;;  %v1705_v27 = vpack.c.bf16 %v495_v19, %v477_v18  ;;  %v1787_v11 = vpack.c.bf16 %v104_v6, %v86_v5  ;;  %v85_v12 = vld [vmem:[#allocation5 + $0x60] sm:$0xff]  ;;  %v122_v19 = vld [vmem:[#allocation5 + $0x188] sm:$0xff] }
  0xe6   :  { %1748 = vmatprep.subr.bf16.mxu1 %v1747_v25  ;;  %v516_v25 = vld [vmem:[#allocation5 + $0xdd8] sm:$0xff]  ;;  %v1769_v28 = vpack.c.bf16 %v497_v22, %v479_v20  ;;  %v105_v18 = vld [vmem:[#allocation5 + $0x100] sm:$0xff]  ;;  %v142_v22 = vld [vmem:[#allocation5 + $0x228] sm:$0xff] }
  0xe7   :  { %v140_v20 = vld [vmem:[#allocation5 + $0x218] sm:$0xff]  ;;  %v286_v6 = vld [vmem:[#allocation5 + $0x6a8] sm:$0xff] }
  0xe8   :  { %1686 = vmatpush1.bf16.msra.mxu0 %v1685_v31  ;;  %v531_v31 = vld [vmem:[#allocation5 + $0xe50] sm:$0xff]  ;;  %v268_v5 = vld [vmem:[#allocation5 + $0x618] sm:$0xff] }
  0xe9   :  { %1750 = vmatpush1.bf16.msra.mxu1 %v1749_v32  ;;  %1688 = vmatprep.subr.bf16.mxu0 %v1687_v33  ;;  %v515_v32 = vld [vmem:[#allocation5 + $0xdd0] sm:$0xff]  ;;  %v1771_v33 = vpack.c.bf16 %v534_v26, %v516_v25  ;;  %v1709_v39 = vpack.c.bf16 %v531_v31, %v513_v30  ;;  %v1791_v25 = vpack.c.bf16 %v140_v20, %v122_v19  ;;  %v121_v26 = vld [vmem:[#allocation5 + $0x180] sm:$0xff]  ;;  %v158_v31 = vld [vmem:[#allocation5 + $0x2a8] sm:$0xff] }
  0xea   :  { %1752 = vmatprep.subr.bf16.mxu1 %v1751_v37  ;;  %v552_v37 = vld [vmem:[#allocation5 + $0xef8] sm:$0xff]  ;;  %v1773_v40 = vpack.c.bf16 %v533_v34, %v515_v32  ;;  %v141_v30 = vld [vmem:[#allocation5 + $0x220] sm:$0xff]  ;;  %v322_v20 = vld [vmem:[#allocation5 + $0x7c8] sm:$0xff] }
  0xeb   :  { %v176_v32 = vld [vmem:[#allocation5 + $0x338] sm:$0xff] }
  0xec   :  { %1690 = vmatpush1.bf16.msra.mxu0 %v1689_v43  ;;  %v567_v43 = vld [vmem:[#allocation5 + $0xf70] sm:$0xff]  ;;  %v160_v34 = vld [vmem:[#allocation5 + $0x2b8] sm:$0xff] }
  0xed   :  { %1754 = vmatpush1.bf16.msra.mxu1 %v1753_v44  ;;  %1692 = vmatprep.subr.bf16.mxu0 %v1691_v45  ;;  %v551_v44 = vld [vmem:[#allocation5 + $0xef0] sm:$0xff]  ;;  %v1775_v45 = vpack.c.bf16 %v570_v38, %v552_v37  ;;  %v1713_v50 = vpack.c.bf16 %v567_v43, %v549_v42  ;;  %v1795_v38 = vpack.c.bf16 %v176_v32, %v158_v31  ;;  %v177_v43 = vld [vmem:[#allocation5 + $0x340] sm:$0xff]  ;;  %v304_v19 = vld [vmem:[#allocation5 + $0x738] sm:$0xff] }
  0xee   :  { %1756 = vmatprep.subr.bf16.mxu1 %v1755_v48  ;;  %v588_v48 = vld [vmem:[#allocation5 + $0x1018] sm:$0xff]  ;;  %v1777_v51 = vpack.c.bf16 %v569_v46, %v551_v44  ;;  %v1859_v42 = vpack.c.bf16 %v178_v35, %v160_v34  ;;  %v194_v44 = vld [vmem:[#allocation5 + $0x3c8] sm:$0xff] }
  0xef   :  { %v2233_v46 = vld [vmem:[#allocation2 + $0x8] sm:$0xff]  ;;  %v358_v32 = vld [vmem:[#allocation5 + $0x8e8] sm:$0xff] }
  0xf0   :  { %1694 = vmatpush1.bf16.msra.mxu0 %v1693_v54  ;;  %v603_v54 = vld [vmem:[#allocation5 + $0x1090] sm:$0xff]  ;;  %v340_v31 = vld [vmem:[#allocation5 + $0x858] sm:$0xff] }
  0xf1   :  { %1758 = vmatpush1.bf16.msra.mxu1 %v1757_v55  ;;  %1696 = vmatprep.subr.bf16.mxu0 %v1695_v56  ;;  %v587_v55 = vld [vmem:[#allocation5 + $0x1010] sm:$0xff]  ;;  %v1779_v56 = vpack.c.bf16 %v606_v49, %v588_v48  ;;  %v1717_v61 = vpack.c.bf16 %v603_v54, %v585_v53  ;;  %v1863_v54 = vpack.c.bf16 %v214_v47, %v196_v15 }
  0xf2   :  { %1760 = vmatprep.subr.bf16.mxu1 %v1759_v59  ;;  %v624_v59 = vld [vmem:[#allocation5 + $0x1138] sm:$0xff]  ;;  %v1781_v62 = vpack.c.bf16 %v605_v57, %v587_v55  ;;  %v195_v53 = vld [vmem:[#allocation5 + $0x3d0] sm:$0xff]  ;;  %v213_v55 = vld [vmem:[#allocation5 + $0x460] sm:$0xff] }
  0xf3   :  { %v248_v57 = vld [vmem:[#allocation5 + $0x578] sm:$0xff] }
  0xf4   :  { %1698 = vmatpush1.bf16.msra.mxu0 %v1697_v1  ;;  %v639_v1 = vld [vmem:[#allocation5 + $0x11b0] sm:$0xff] }
  0xf5   :  { %1762 = vmatpush1.bf16.msra.mxu1 %v1761_v2  ;;  %1700 = vmatprep.subr.bf16.mxu0 %v1699_v3  ;;  %v623_v2 = vld [vmem:[#allocation5 + $0x1130] sm:$0xff]  ;;  %v1783_v3 = vpack.c.bf16 %v642_v60, %v624_v59  ;;  %v1721_v9 = vpack.c.bf16 %v639_v1, %v621_v0  ;;  %v1865_v60 = vpack.c.bf16 %v213_v55, %v195_v53  ;;  %v393_v53 = vld [vmem:[#allocation5 + $0xa00] sm:$0xff]  ;;  %v428_v55 = vld [vmem:[#allocation5 + $0xb18] sm:$0xff] }
  0xf6   :  { %1764 = vmatprep.subr.bf16.mxu1 %v1763_v7  ;;  %v88_v7 = vld [vmem:[#allocation5 + $0x78] sm:$0xff]  ;;  %v1785_v10 = vpack.c.bf16 %v641_v4, %v623_v2  ;;  %v231_v0 = vld [vmem:[#allocation5 + $0x4f0] sm:$0xff]  ;;  %v1867_v1 = vpack.c.bf16 %v250_v16, %v232_v58  ;;  %v249_v2 = vld [vmem:[#allocation5 + $0x580] sm:$0xff] }
  0xf7   :  { %v284_v4 = vld [vmem:[#allocation5 + $0x698] sm:$0xff] }
  0xf8   :  { %1702 = vmatpush1.bf16.msra.mxu0 %v1701_v13  ;;  %v103_v13 = vld [vmem:[#allocation5 + $0xf0] sm:$0xff] }
  0xf9   :  { %1766 = vmatpush1.bf16.msra.mxu1 %v1765_v14  ;;  %1704 = vmatprep.subr.bf16.mxu0 %v1703_v17  ;;  %v87_v14 = vld [vmem:[#allocation5 + $0x70] sm:$0xff]  ;;  %v1851_v17 = vpack.c.bf16 %v106_v8, %v88_v7  ;;  %v1789_v23 = vpack.c.bf16 %v103_v13, %v85_v12  ;;  %v1869_v8 = vpack.c.bf16 %v249_v2, %v231_v0  ;;  %v429_v0 = vld [vmem:[#allocation5 + $0xb20] sm:$0xff]  ;;  %v464_v2 = vld [vmem:[#allocation5 + $0xc38] sm:$0xff] }
  0xfa   :  { %1768 = vmatprep.subr.bf16.mxu1 %v1767_v21  ;;  %v124_v21 = vld [vmem:[#allocation5 + $0x198] sm:$0xff]  ;;  %v1853_v24 = vpack.c.bf16 %v105_v18, %v87_v14  ;;  %v267_v12 = vld [vmem:[#allocation5 + $0x610] sm:$0xff]  ;;  %v1871_v13 = vpack.c.bf16 %v286_v6, %v268_v5  ;;  %v285_v14 = vld [vmem:[#allocation5 + $0x6a0] sm:$0xff] }
  0xfb   :  { %v320_v18 = vld [vmem:[#allocation5 + $0x7b8] sm:$0xff] }
  0xfc   :  { %1706 = vmatpush1.bf16.msra.mxu0 %v1705_v27  ;;  %v139_v27 = vld [vmem:[#allocation5 + $0x210] sm:$0xff] }
  0xfd   :  { %1770 = vmatpush1.bf16.msra.mxu1 %v1769_v28  ;;  %1708 = vmatprep.subr.bf16.mxu0 %v1707_v29  ;;  %v123_v28 = vld [vmem:[#allocation5 + $0x190] sm:$0xff]  ;;  %v1855_v29 = vpack.c.bf16 %v142_v22, %v124_v21  ;;  %v1793_v36 = vpack.c.bf16 %v139_v27, %v121_v26  ;;  %v1873_v22 = vpack.c.bf16 %v285_v14, %v267_v12  ;;  %v465_v12 = vld [vmem:[#allocation5 + $0xc40] sm:$0xff]  ;;  %v500_v14 = vld [vmem:[#allocation5 + $0xd58] sm:$0xff] }
  0xfe   :  { %1772 = vmatprep.subr.bf16.mxu1 %v1771_v33  ;;  %v2229_v33 = vld [vmem:[#allocation2] sm:$0xff]  ;;  %v1857_v37 = vpack.c.bf16 %v141_v30, %v123_v28  ;;  %v1875_v27 = vpack.c.bf16 %v322_v20, %v304_v19  ;;  %v321_v28 = vld [vmem:[#allocation5 + $0x7c0] sm:$0xff]  ;;  %v356_v30 = vld [vmem:[#allocation5 + $0x8d8] sm:$0xff] }
  0xff   :  { %v303_v26 = vld [vmem:[#allocation5 + $0x730] sm:$0xff] }
 0x100   :  { %1710 = vmatpush1.bf16.msra.mxu0 %v1709_v39  ;;  %v157_v39 = vld [vmem:[#allocation5 + $0x2a0] sm:$0xff]  ;;  %v1877_v35 = vpack.c.bf16 %v321_v28, %v303_v26  ;;  %v536_v28 = vld [vmem:[#allocation5 + $0xe78] sm:$0xff] }
 0x101   :  { %1774 = vmatpush1.bf16.msra.mxu1 %v1773_v40  ;;  %1712 = vmatprep.subr.bf16.mxu0 %v1711_v41  ;;  %v175_v40 = vld [vmem:[#allocation5 + $0x330] sm:$0xff]  ;;  %v501_v26 = vld [vmem:[#allocation5 + $0xd60] sm:$0xff] }
 0x102   :  { %1776 = vmatprep.subr.bf16.mxu1 %v1775_v45  ;;  %v159_v41 = vld [vmem:[#allocation5 + $0x2b0] sm:$0xff]  ;;  %v212_v45 = vld [vmem:[#allocation5 + $0x458] sm:$0xff]  ;;  %v1797_v48 = vpack.c.bf16 %v175_v40, %v157_v39  ;;  %v1879_v40 = vpack.c.bf16 %v358_v32, %v340_v31 }
 0x103   :  { %v1861_v49 = vpack.c.bf16 %v177_v43, %v159_v41  ;;  %v339_v39 = vld [vmem:[#allocation5 + $0x850] sm:$0xff]  ;;  %v357_v41 = vld [vmem:[#allocation5 + $0x8e0] sm:$0xff]  ;;  %v392_v43 = vld [vmem:[#allocation5 + $0x9f8] sm:$0xff] }
 0x104   :  { %1714 = vmatpush1.bf16.msra.mxu0 %v1713_v50  ;;  %v1799_v50 = vpack.c.bf16 %v212_v45, %v194_v44  ;;  %v376_v44 = vld [vmem:[#allocation5 + $0x978] sm:$0xff]  ;;  %v394_v45 = vld [vmem:[#allocation5 + $0xa08] sm:$0xff]  ;;  %v1881_v47 = vpack.c.bf16 %v357_v41, %v339_v39  ;;  %v537_v39 = vld [vmem:[#allocation5 + $0xe80] sm:$0xff] }
 0x105   :  { %1778 = vmatpush1.bf16.msra.mxu1 %v1777_v51  ;;  %1716 = vmatprep.subr.bf16.mxu0 %v1715_v52  ;;  %v193_v51 = vld [vmem:[#allocation5 + $0x3c0] sm:$0xff]  ;;  %v211_v52 = vld [vmem:[#allocation5 + $0x450] sm:$0xff]  ;;  %v572_v41 = vld [vmem:[#allocation5 + $0xf98] sm:$0xff] }
 0x106   :  { %1780 = vmatprep.subr.bf16.mxu1 %v1779_v56  ;;  %v230_v56 = vld [vmem:[#allocation5 + $0x4e8] sm:$0xff]  ;;  %v1801_v59 = vpack.c.bf16 %v211_v52, %v193_v51  ;;  %v375_v51 = vld [vmem:[#allocation5 + $0x970] sm:$0xff]  ;;  %v1883_v52 = vpack.c.bf16 %v394_v45, %v376_v44 }
 0x107   :  { %v1885_v16 = vpack.c.bf16 %v393_v53, %v375_v51  ;;  %v573_v51 = vld [vmem:[#allocation5 + $0xfa0] sm:$0xff]  ;;  %v608_v53 = vld [vmem:[#allocation5 + $0x10b8] sm:$0xff] }
 0x108   :  { %1718 = vmatpush1.bf16.msra.mxu0 %v1717_v61  ;;  %v1803_v61 = vpack.c.bf16 %v248_v57, %v230_v56  ;;  %v412_v56 = vld [vmem:[#allocation5 + $0xa98] sm:$0xff]  ;;  %v430_v57 = vld [vmem:[#allocation5 + $0xb28] sm:$0xff] }
 0x109   :  { %1782 = vmatpush1.bf16.msra.mxu1 %v1781_v62  ;;  %1720 = vmatprep.subr.bf16.mxu0 %v1719_v63  ;;  %v229_v62 = vld [vmem:[#allocation5 + $0x4e0] sm:$0xff]  ;;  %v247_v63 = vld [vmem:[#allocation5 + $0x570] sm:$0xff] }
 0x10a   :  { %1784 = vmatprep.subr.bf16.mxu1 %v1783_v3  ;;  %v266_v3 = vld [vmem:[#allocation5 + $0x608] sm:$0xff]  ;;  %v1805_v7 = vpack.c.bf16 %v247_v63, %v229_v62  ;;  %v411_v62 = vld [vmem:[#allocation5 + $0xa90] sm:$0xff]  ;;  %v1887_v63 = vpack.c.bf16 %v430_v57, %v412_v56 }
 0x10b   :  { %v1889_v6 = vpack.c.bf16 %v429_v0, %v411_v62  ;;  %v609_v62 = vld [vmem:[#allocation5 + $0x10c0] sm:$0xff]  ;;  %v644_v0 = vld [vmem:[#allocation5 + $0x11d8] sm:$0xff] }
 0x10c   :  { %1722 = vmatpush1.bf16.msra.mxu0 %v1721_v9  ;;  %v1807_v9 = vpack.c.bf16 %v284_v4, %v266_v3  ;;  %v448_v3 = vld [vmem:[#allocation5 + $0xbb8] sm:$0xff]  ;;  %v466_v4 = vld [vmem:[#allocation5 + $0xc48] sm:$0xff] }
 0x10d   :  { %1786 = vmatpush1.bf16.msra.mxu1 %v1785_v10  ;;  %1788 = vmatprep.subr.bf16.mxu0 %v1787_v11  ;;  %v265_v10 = vld [vmem:[#allocation5 + $0x600] sm:$0xff]  ;;  %v283_v11 = vld [vmem:[#allocation5 + $0x690] sm:$0xff] }
 0x10e   :  { %1852 = vmatprep.subr.bf16.mxu1 %v1851_v17  ;;  %v302_v17 = vld [vmem:[#allocation5 + $0x728] sm:$0xff]  ;;  %v1809_v21 = vpack.c.bf16 %v283_v11, %v265_v10  ;;  %v447_v10 = vld [vmem:[#allocation5 + $0xbb0] sm:$0xff]  ;;  %v1891_v11 = vpack.c.bf16 %v466_v4, %v448_v3 }
 0x10f   :  { %998 = vmatmul.mubr.f32.vlgmr.msra.gmra.mrb[4].mxu0 %v2229_v33  ;;  %v1893_v20 = vpack.c.bf16 %v465_v12, %v447_v10  ;;  %v645_v10 = vld [vmem:[#allocation5 + $0x11e0] sm:$0xff]  ;;  %v108_v12 = vld [vmem:[#allocation5 + $0x118] sm:$0xff] }
 0x110   :  { %1069 = vmatmul.mubr.f32.vlgmr.msra.gmra.mrb[4].mxu1 %v2229_v33  ;;  %1790 = vmatpush1.bf16.msra.mxu0 %v1789_v23  ;;  %v1811_v23 = vpack.c.bf16 %v320_v18, %v302_v17  ;;  %v484_v17 = vld [vmem:[#allocation5 + $0xcd8] sm:$0xff]  ;;  %v502_v18 = vld [vmem:[#allocation5 + $0xd68] sm:$0xff] }
 0x111   :  { %1854 = vmatpush1.bf16.msra.mxu1 %v1853_v24  ;;  %1792 = vmatprep.subr.bf16.mxu0 %v1791_v25  ;;  %v301_v24 = vld [vmem:[#allocation5 + $0x720] sm:$0xff]  ;;  %v319_v25 = vld [vmem:[#allocation5 + $0x7b0] sm:$0xff] }
 0x112   :  { %1856 = vmatprep.subr.bf16.mxu1 %v1855_v29  ;;  %1139 = vmatprep.mubr.f32.mxu0 %v2233_v46  ;;  %v338_v29 = vld [vmem:[#allocation5 + $0x848] sm:$0xff]  ;;  %v1813_v34 = vpack.c.bf16 %v319_v25, %v301_v24  ;;  %v483_v24 = vld [vmem:[#allocation5 + $0xcd0] sm:$0xff]  ;;  %v1895_v25 = vpack.c.bf16 %v502_v18, %v484_v17  ;;  %v89_v18 = vld [vmem:[#allocation5 + $0x80] sm:$0xff] }
 0x113   :  { %1210 = vmatprep.mubr.f32.mxu1 %v2233_v46  ;;  %v1897_v32 = vpack.c.bf16 %v501_v26, %v483_v24  ;;  %v125_v24 = vld [vmem:[#allocation5 + $0x1a0] sm:$0xff]  ;;  %v162_v26 = vld [vmem:[#allocation5 + $0x2c8] sm:$0xff] }
 0x114   :  { %1794 = vmatpush1.bf16.msra.mxu0 %v1793_v36  ;;  %v1815_v36 = vpack.c.bf16 %v356_v30, %v338_v29  ;;  %v520_v29 = vld [vmem:[#allocation5 + $0xdf8] sm:$0xff]  ;;  %v538_v30 = vld [vmem:[#allocation5 + $0xe88] sm:$0xff] }
 0x115   :  { %1858 = vmatpush1.bf16.msra.mxu1 %v1857_v37  ;;  %1796 = vmatprep.subr.bf16.mxu0 %v1795_v38  ;;  %v337_v37 = vld [vmem:[#allocation5 + $0x840] sm:$0xff]  ;;  %v355_v38 = vld [vmem:[#allocation5 + $0x8d0] sm:$0xff] }
 0x116   :  { %1860 = vmatprep.subr.bf16.mxu1 %v1859_v42  ;;  %v374_v42 = vld [vmem:[#allocation5 + $0x968] sm:$0xff]  ;;  %v1817_v15 = vpack.c.bf16 %v355_v38, %v337_v37  ;;  %v519_v37 = vld [vmem:[#allocation5 + $0xdf0] sm:$0xff]  ;;  %v1899_v38 = vpack.c.bf16 %v538_v30, %v520_v29  ;;  %v161_v30 = vld [vmem:[#allocation5 + $0x2c0] sm:$0xff] }
 0x117   :  { %v1901_v45 = vpack.c.bf16 %v537_v39, %v519_v37  ;;  %v197_v37 = vld [vmem:[#allocation5 + $0x3e0] sm:$0xff]  ;;  %v234_v39 = vld [vmem:[#allocation5 + $0x508] sm:$0xff] }
 0x118   :  { %1798 = vmatpush1.bf16.msra.mxu0 %v1797_v48  ;;  %v1819_v48 = vpack.c.bf16 %v392_v43, %v374_v42  ;;  %v556_v42 = vld [vmem:[#allocation5 + $0xf18] sm:$0xff]  ;;  %v574_v43 = vld [vmem:[#allocation5 + $0xfa8] sm:$0xff] }
 0x119   :  { %1862 = vmatpush1.bf16.msra.mxu1 %v1861_v49  ;;  %1800 = vmatprep.subr.bf16.mxu0 %v1799_v50  ;;  %v373_v49 = vld [vmem:[#allocation5 + $0x960] sm:$0xff]  ;;  %v391_v50 = vld [vmem:[#allocation5 + $0x9f0] sm:$0xff] }
 0x11a   :  { %1864 = vmatprep.subr.bf16.mxu1 %v1863_v54  ;;  %v410_v54 = vld [vmem:[#allocation5 + $0xa88] sm:$0xff]  ;;  %v1821_v58 = vpack.c.bf16 %v391_v50, %v373_v49  ;;  %v555_v49 = vld [vmem:[#allocation5 + $0xf10] sm:$0xff]  ;;  %v1903_v50 = vpack.c.bf16 %v574_v43, %v556_v42  ;;  %v233_v43 = vld [vmem:[#allocation5 + $0x500] sm:$0xff] }
 0x11b   :  { %v1905_v57 = vpack.c.bf16 %v573_v51, %v555_v49  ;;  %v287_v49 = vld [vmem:[#allocation5 + $0x6b0] sm:$0xff]  ;;  %v324_v51 = vld [vmem:[#allocation5 + $0x7d8] sm:$0xff] }
 0x11c   :  { %1802 = vmatpush1.bf16.msra.mxu0 %v1801_v59  ;;  %v1823_v59 = vpack.c.bf16 %v428_v55, %v410_v54  ;;  %v592_v54 = vld [vmem:[#allocation5 + $0x1038] sm:$0xff]  ;;  %v610_v55 = vld [vmem:[#allocation5 + $0x10c8] sm:$0xff] }
 0x11d   :  { %1866 = vmatpush1.bf16.msra.mxu1 %v1865_v60  ;;  %1804 = vmatprep.subr.bf16.mxu0 %v1803_v61  ;;  %v409_v60 = vld [vmem:[#allocation5 + $0xa80] sm:$0xff]  ;;  %v427_v61 = vld [vmem:[#allocation5 + $0xb10] sm:$0xff] }
 0x11e   :  { %1868 = vmatprep.subr.bf16.mxu1 %v1867_v1  ;;  %v446_v1 = vld [vmem:[#allocation5 + $0xba8] sm:$0xff]  ;;  %v1825_v5 = vpack.c.bf16 %v427_v61, %v409_v60  ;;  %v591_v60 = vld [vmem:[#allocation5 + $0x1030] sm:$0xff]  ;;  %v1907_v61 = vpack.c.bf16 %v610_v55, %v592_v54  ;;  %v305_v54 = vld [vmem:[#allocation5 + $0x740] sm:$0xff] }
 0x11f   :  { %v1909_v4 = vpack.c.bf16 %v609_v62, %v591_v60  ;;  %v323_v55 = vld [vmem:[#allocation5 + $0x7d0] sm:$0xff] }
 0x120   :  { %1806 = vmatpush1.bf16.msra.mxu0 %v1805_v7  ;;  %v1827_v7 = vpack.c.bf16 %v464_v2, %v446_v1  ;;  %v628_v1 = vld [vmem:[#allocation5 + $0x1158] sm:$0xff]  ;;  %v646_v2 = vld [vmem:[#allocation5 + $0x11e8] sm:$0xff]  ;;  %v1941_v62 = vpack.c.bf16 %v323_v55, %v305_v54 }
 0x121   :  { %1870 = vmatpush1.bf16.msra.mxu1 %v1869_v8  ;;  %1808 = vmatprep.subr.bf16.mxu0 %v1807_v9  ;;  %v445_v8 = vld [vmem:[#allocation5 + $0xba0] sm:$0xff]  ;;  %v463_v9 = vld [vmem:[#allocation5 + $0xc30] sm:$0xff] }
 0x122   :  { %1872 = vmatprep.subr.bf16.mxu1 %v1871_v13  ;;  %v482_v13 = vld [vmem:[#allocation5 + $0xcc8] sm:$0xff]  ;;  %v1829_v19 = vpack.c.bf16 %v463_v9, %v445_v8  ;;  %v627_v8 = vld [vmem:[#allocation5 + $0x1150] sm:$0xff]  ;;  %v1911_v9 = vpack.c.bf16 %v646_v2, %v628_v1  ;;  %v341_v1 = vld [vmem:[#allocation5 + $0x860] sm:$0xff] }
 0x123   :  { %v359_v2 = vld [vmem:[#allocation5 + $0x8f0] sm:$0xff] }
 0x124   :  { %1810 = vmatpush1.bf16.msra.mxu0 %v1809_v21  ;;  %v1831_v21 = vpack.c.bf16 %v500_v14, %v482_v13  ;;  %v1913_v14 = vpack.c.bf16 %v645_v10, %v627_v8  ;;  %v395_v8 = vld [vmem:[#allocation5 + $0xa10] sm:$0xff]  ;;  %v432_v10 = vld [vmem:[#allocation5 + $0xb38] sm:$0xff] }
 0x125   :  { %1874 = vmatpush1.bf16.msra.mxu1 %v1873_v22  ;;  %1812 = vmatprep.subr.bf16.mxu0 %v1811_v23  ;;  %v481_v22 = vld [vmem:[#allocation5 + $0xcc0] sm:$0xff]  ;;  %v499_v23 = vld [vmem:[#allocation5 + $0xd50] sm:$0xff] }
 0x126   :  { %1876 = vmatprep.subr.bf16.mxu1 %v1875_v27  ;;  %v518_v27 = vld [vmem:[#allocation5 + $0xde8] sm:$0xff]  ;;  %v1833_v31 = vpack.c.bf16 %v499_v23, %v481_v22 }
 0x128   :  { %1814 = vmatpush1.bf16.msra.mxu0 %v1813_v34  ;;  %v1835_v34 = vpack.c.bf16 %v536_v28, %v518_v27  ;;  %v180_v27 = vld [vmem:[#allocation5 + $0x358] sm:$0xff] }
 0x129   :  { %1878 = vmatpush1.bf16.msra.mxu1 %v1877_v35  ;;  %1816 = vmatprep.subr.bf16.mxu0 %v1815_v36  ;;  %v517_v35 = vld [vmem:[#allocation5 + $0xde0] sm:$0xff]  ;;  %v535_v36 = vld [vmem:[#allocation5 + $0xe70] sm:$0xff]  ;;  %v1923_v29 = vpack.c.bf16 %v180_v27, %v162_v26 }
 0x12a   :  { %1880 = vmatprep.subr.bf16.mxu1 %v1879_v40  ;;  %v554_v40 = vld [vmem:[#allocation5 + $0xf08] sm:$0xff]  ;;  %v1837_v44 = vpack.c.bf16 %v535_v36, %v517_v35  ;;  %v485_v27 = vld [vmem:[#allocation5 + $0xce0] sm:$0xff] }
 0x12c   :  { %1818 = vmatpush1.bf16.msra.mxu0 %v1817_v15  ;;  %v1839_v15 = vpack.c.bf16 %v572_v41, %v554_v40  ;;  %v252_v40 = vld [vmem:[#allocation5 + $0x598] sm:$0xff] }
 0x12d   :  { %1882 = vmatpush1.bf16.msra.mxu1 %v1881_v47  ;;  %1820 = vmatprep.subr.bf16.mxu0 %v1819_v48  ;;  %v553_v47 = vld [vmem:[#allocation5 + $0xf00] sm:$0xff]  ;;  %v571_v48 = vld [vmem:[#allocation5 + $0xf90] sm:$0xff]  ;;  %v1931_v42 = vpack.c.bf16 %v252_v40, %v234_v39 }
 0x12e   :  { %1884 = vmatprep.subr.bf16.mxu1 %v1883_v52  ;;  %v590_v52 = vld [vmem:[#allocation5 + $0x1028] sm:$0xff]  ;;  %v1841_v56 = vpack.c.bf16 %v571_v48, %v553_v47  ;;  %v269_v48 = vld [vmem:[#allocation5 + $0x620] sm:$0xff] }
 0x12f   :  { %v557_v40 = vld [vmem:[#allocation5 + $0xf20] sm:$0xff] }
 0x130   :  { %1822 = vmatpush1.bf16.msra.mxu0 %v1821_v58  ;;  %v1843_v58 = vpack.c.bf16 %v608_v53, %v590_v52  ;;  %v1937_v52 = vpack.c.bf16 %v287_v49, %v269_v48  ;;  %v648_v48 = vld [vmem:[#allocation5 + $0x11f8] sm:$0xff] }
 0x131   :  { %1886 = vmatpush1.bf16.msra.mxu1 %v1885_v16  ;;  %1824 = vmatprep.subr.bf16.mxu0 %v1823_v59  ;;  %v589_v16 = vld [vmem:[#allocation5 + $0x1020] sm:$0xff]  ;;  %v607_v59 = vld [vmem:[#allocation5 + $0x10b0] sm:$0xff] }
 0x132   :  { %1888 = vmatprep.subr.bf16.mxu1 %v1887_v63  ;;  %v626_v63 = vld [vmem:[#allocation5 + $0x1148] sm:$0xff]  ;;  %v1845_v3 = vpack.c.bf16 %v607_v59, %v589_v16 }
 0x134   :  { %1826 = vmatpush1.bf16.msra.mxu0 %v1825_v5  ;;  %v1847_v5 = vpack.c.bf16 %v644_v0, %v626_v63 }
 0x135   :  { %1890 = vmatpush1.bf16.msra.mxu1 %v1889_v6  ;;  %1828 = vmatprep.subr.bf16.mxu0 %v1827_v7  ;;  %v625_v6 = vld [vmem:[#allocation5 + $0x1140] sm:$0xff]  ;;  %v643_v7 = vld [vmem:[#allocation5 + $0x11d0] sm:$0xff] }
 0x136   :  { %1892 = vmatprep.subr.bf16.mxu1 %v1891_v11  ;;  %v90_v11 = vld [vmem:[#allocation5 + $0x88] sm:$0xff]  ;;  %v1849_v13 = vpack.c.bf16 %v643_v7, %v625_v6  ;;  %v377_v7 = vld [vmem:[#allocation5 + $0x980] sm:$0xff] }
 0x137   :  { %v1915_v17 = vpack.c.bf16 %v108_v12, %v90_v11  ;;  %v1949_v11 = vpack.c.bf16 %v395_v8, %v377_v7 }
 0x138   :  { %1830 = vmatpush1.bf16.msra.mxu0 %v1829_v19  ;;  %v107_v19 = vld [vmem:[#allocation5 + $0x110] sm:$0xff] }
 0x139   :  { %1894 = vmatpush1.bf16.msra.mxu1 %v1893_v20  ;;  %1832 = vmatprep.subr.bf16.mxu0 %v1831_v21  ;;  %v126_v20 = vld [vmem:[#allocation5 + $0x1a8] sm:$0xff]  ;;  %v144_v21 = vld [vmem:[#allocation5 + $0x238] sm:$0xff]  ;;  %v1917_v22 = vpack.c.bf16 %v107_v19, %v89_v18 }
 0x13a   :  { %1896 = vmatprep.subr.bf16.mxu1 %v1895_v25  ;;  %v1919_v23 = vpack.c.bf16 %v144_v21, %v126_v20  ;;  %v143_v25 = vld [vmem:[#allocation5 + $0x230] sm:$0xff]  ;;  %v468_v18 = vld [vmem:[#allocation5 + $0xc58] sm:$0xff]  ;;  %v449_v21 = vld [vmem:[#allocation5 + $0xbc0] sm:$0xff] }
 0x13b   :  { %v1921_v28 = vpack.c.bf16 %v143_v25, %v125_v24  ;;  %v504_v24 = vld [vmem:[#allocation5 + $0xd78] sm:$0xff] }
 0x13c   :  { %1834 = vmatpush1.bf16.msra.mxu0 %v1833_v31  ;;  %v179_v31 = vld [vmem:[#allocation5 + $0x350] sm:$0xff] }
 0x13d   :  { %1898 = vmatpush1.bf16.msra.mxu1 %v1897_v32  ;;  %1836 = vmatprep.subr.bf16.mxu0 %v1835_v34  ;;  %v198_v32 = vld [vmem:[#allocation5 + $0x3e8] sm:$0xff]  ;;  %v216_v34 = vld [vmem:[#allocation5 + $0x478] sm:$0xff]  ;;  %v1925_v35 = vpack.c.bf16 %v179_v31, %v161_v30 }
 0x13e   :  { %1900 = vmatprep.subr.bf16.mxu1 %v1899_v38  ;;  %v1927_v36 = vpack.c.bf16 %v216_v34, %v198_v32  ;;  %v215_v38 = vld [vmem:[#allocation5 + $0x470] sm:$0xff]  ;;  %v540_v30 = vld [vmem:[#allocation5 + $0xe98] sm:$0xff]  ;;  %v521_v34 = vld [vmem:[#allocation5 + $0xe00] sm:$0xff] }
 0x13f   :  { %v1929_v41 = vpack.c.bf16 %v215_v38, %v197_v37  ;;  %v576_v37 = vld [vmem:[#allocation5 + $0xfb8] sm:$0xff] }
 0x140   :  { %1838 = vmatpush1.bf16.msra.mxu0 %v1837_v44  ;;  %v251_v44 = vld [vmem:[#allocation5 + $0x590] sm:$0xff] }
 0x141   :  { %1902 = vmatpush1.bf16.msra.mxu1 %v1901_v45  ;;  %1840 = vmatprep.subr.bf16.mxu0 %v1839_v15  ;;  %v270_v45 = vld [vmem:[#allocation5 + $0x628] sm:$0xff]  ;;  %v288_v15 = vld [vmem:[#allocation5 + $0x6b8] sm:$0xff] }
 0x142   :  { %1904 = vmatprep.subr.bf16.mxu1 %v1903_v50  ;;  %v1935_v47 = vpack.c.bf16 %v288_v15, %v270_v45  ;;  %v306_v50 = vld [vmem:[#allocation5 + $0x748] sm:$0xff]  ;;  %v593_v15 = vld [vmem:[#allocation5 + $0x1040] sm:$0xff] }
 0x143   :  { %v1939_v53 = vpack.c.bf16 %v324_v51, %v306_v50  ;;  %v629_v51 = vld [vmem:[#allocation5 + $0x1160] sm:$0xff] }
 0x144   :  { %1842 = vmatpush1.bf16.msra.mxu0 %v1841_v56 }
 0x145   :  { %1906 = vmatpush1.bf16.msra.mxu1 %v1905_v57  ;;  %1844 = vmatprep.subr.bf16.mxu0 %v1843_v58  ;;  %v342_v57 = vld [vmem:[#allocation5 + $0x868] sm:$0xff]  ;;  %v360_v58 = vld [vmem:[#allocation5 + $0x8f8] sm:$0xff] }
 0x146   :  { %1908 = vmatprep.subr.bf16.mxu1 %v1907_v61  ;;  %v1943_v0 = vpack.c.bf16 %v360_v58, %v342_v57 }
 0x148   :  { %1846 = vmatpush1.bf16.msra.mxu0 %v1845_v3  ;;  %v378_v3 = vld [vmem:[#allocation5 + $0x988] sm:$0xff] }
 0x149   :  { %1910 = vmatpush1.bf16.msra.mxu1 %v1909_v4  ;;  %1848 = vmatprep.subr.bf16.mxu0 %v1847_v5  ;;  %v396_v4 = vld [vmem:[#allocation5 + $0xa18] sm:$0xff]  ;;  %v1945_v5 = vpack.c.bf16 %v359_v2, %v341_v1  ;;  %v2137_v1 = vmov 0.0  }
 0x14a   :  { %1912 = vmatprep.subr.bf16.mxu1 %v1911_v9  ;;  %v1947_v6 = vpack.c.bf16 %v396_v4, %v378_v3  ;;  %v414_v9 = vld [vmem:[#allocation5 + $0xaa8] sm:$0xff] }
 0x14b   :  { %v1951_v12 = vpack.c.bf16 %v432_v10, %v414_v9  ;;  %v1288_v9 = vld [vmem:[#allocation7] sm:$0xff]  ;;  %v1289_v10 = vld [vmem:[#allocation7 + $0x8] sm:$0xff] }
 0x14c   :  { %1850 = vmatpush1.bf16.msra.mxu0 %v1849_v13  ;;  %v413_v13 = vld [vmem:[#allocation5 + $0xaa0] sm:$0xff] }
 0x14d   :  { %1914 = vmatpush1.bf16.msra.mxu1 %v1913_v14  ;;  %1916 = vmatprep.subr.bf16.mxu0 %v1915_v17  ;;  %v431_v14 = vld [vmem:[#allocation5 + $0xb30] sm:$0xff]  ;;  %v450_v17 = vld [vmem:[#allocation5 + $0xbc8] sm:$0xff] }
 0x14e   :  { %v1953_v19 = vpack.c.bf16 %v431_v14, %v413_v13  ;;  %v1955_v20 = vpack.c.bf16 %v468_v18, %v450_v17 }
 0x14f   :  { %1140 = vmatmul.mubr.f32.vlgmr.msra.gmra.mrb[6].mxu0 %v2229_v33 }
 0x150   :  { %1211 = vmatmul.mubr.f32.vlgmr.msra.gmra.mrb[6].mxu1 %v2229_v33  ;;  %1918 = vmatpush1.bf16.msra.mxu0 %v1917_v22  ;;  %v467_v22 = vld [vmem:[#allocation5 + $0xc50] sm:$0xff] }
 0x151   :  { %1920 = vmatprep.subr.bf16.mxu0 %v1919_v23  ;;  %1281 = vmatprep.mubr.f32.mxu0 %v2233_v46  ;;  %v1933_v46 = vpack.c.bf16 %v251_v44, %v233_v43  ;;  %v486_v23 = vld [vmem:[#allocation5 + $0xce8] sm:$0xff]  ;;  %v1957_v25 = vpack.c.bf16 %v467_v22, %v449_v21  ;;  %v612_v43 = vld [vmem:[#allocation5 + $0x10d8] sm:$0xff] }
 0x152   :  { %v1959_v26 = vpack.c.bf16 %v504_v24, %v486_v23  ;;  %1365 = vmatprep.mubr.f32.mxu1 %v2137_v1 }
 0x154   :  { %1922 = vmatpush1.bf16.msra.mxu0 %v1921_v28  ;;  %v503_v28 = vld [vmem:[#allocation5 + $0xd70] sm:$0xff] }
 0x155   :  { %1924 = vmatprep.subr.bf16.mxu0 %v1923_v29  ;;  %v522_v29 = vld [vmem:[#allocation5 + $0xe08] sm:$0xff]  ;;  %v1961_v31 = vpack.c.bf16 %v503_v28, %v485_v27 }
 0x156   :  { %v1963_v32 = vpack.c.bf16 %v540_v30, %v522_v29 }
 0x158   :  { %1926 = vmatpush1.bf16.msra.mxu0 %v1925_v35  ;;  %v539_v35 = vld [vmem:[#allocation5 + $0xe90] sm:$0xff] }
 0x159   :  { %1928 = vmatprep.subr.bf16.mxu0 %v1927_v36  ;;  %v558_v36 = vld [vmem:[#allocation5 + $0xf28] sm:$0xff]  ;;  %v1965_v38 = vpack.c.bf16 %v539_v35, %v521_v34 }
 0x15a   :  { %v1967_v39 = vpack.c.bf16 %v576_v37, %v558_v36 }
 0x15c   :  { %1930 = vmatpush1.bf16.msra.mxu0 %v1929_v41  ;;  %v575_v41 = vld [vmem:[#allocation5 + $0xfb0] sm:$0xff] }
 0x15d   :  { %1932 = vmatprep.subr.bf16.mxu0 %v1931_v42  ;;  %v594_v42 = vld [vmem:[#allocation5 + $0x1048] sm:$0xff]  ;;  %v1969_v44 = vpack.c.bf16 %v575_v41, %v557_v40 }
 0x15e   :  { %v1971_v45 = vpack.c.bf16 %v612_v43, %v594_v42 }
 0x160   :  { %1934 = vmatpush1.bf16.msra.mxu0 %v1933_v46  ;;  %v611_v46 = vld [vmem:[#allocation5 + $0x10d0] sm:$0xff] }
 0x161   :  { %1936 = vmatprep.subr.bf16.mxu0 %v1935_v47  ;;  %v630_v47 = vld [vmem:[#allocation5 + $0x1168] sm:$0xff]  ;;  %v1973_v49 = vpack.c.bf16 %v611_v46, %v593_v15 }
 0x162   :  { %v715_v56 = vpop.f32.mrb[0].mxu0  ;;  %v1975_v50 = vpack.c.bf16 %v648_v48, %v630_v47 }
 0x163   :  { %v786_v16 = vpop.f32.mrb[0].mxu1  ;;  %v717_v59 = vpop.f32.mrb[1].mxu0 }
 0x164   :  { %v1981_v60 = vpack.c.bf16 %v786_v16, %v715_v56  ;;  %v788_v61 = vpop.f32.mrb[1].mxu1  ;;  %1938 = vmatpush1.bf16.msra.mxu0 %v1937_v52  ;;  %v647_v52 = vld [vmem:[#allocation5 + $0x11f0] sm:$0xff] }
 0x165   :  { %v1979_v63 = vpack.c.bf16 %v788_v61, %v717_v59  ;;  %1940 = vmatprep.subr.bf16.mxu0 %v1939_v53  ;;  %v1977_v53 = vpack.c.bf16 %v647_v52, %v629_v51 }
 0x167   :  { %1980 = vmatprep.subr.bf16.mxu1 %v1979_v63 }
 0x168   :  { %1982 = vmatpush1.bf16.msra.mxu1 %v1981_v60  ;;  %1942 = vmatpush1.bf16.msra.mxu0 %v1941_v62 }
 0x169   :  { %1944 = vmatprep.subr.bf16.mxu0 %v1943_v0 }
 0x16c   :  { %1946 = vmatpush1.bf16.msra.mxu0 %v1945_v5 }
 0x16d   :  { %1948 = vmatprep.subr.bf16.mxu0 %v1947_v6 }
 0x170   :  { %1950 = vmatpush1.bf16.msra.mxu0 %v1949_v11  ;;  %v1290_v11 = vld [vmem:[#allocation8] sm:$0xff] }
 0x171   :  { %1952 = vmatprep.subr.bf16.mxu0 %v1951_v12  ;;  %v1291_v12 = vld [vmem:[#allocation8 + $0x8] sm:$0xff] }
 0x174   :  { %1954 = vmatpush1.bf16.msra.mxu0 %v1953_v19  ;;  %v1292_v19 = vld [vmem:[#allocation8 + $0x10] sm:$0xff] }
 0x175   :  { %1956 = vmatprep.subr.bf16.mxu0 %v1955_v20  ;;  %v1293_v20 = vld [vmem:[#allocation8 + $0x18] sm:$0xff] }
 0x178   :  { %1958 = vmatpush1.bf16.msra.mxu0 %v1957_v25 }
 0x179   :  { %1960 = vmatprep.subr.bf16.mxu0 %v1959_v26 }
 0x17c   :  { %1962 = vmatpush1.bf16.msra.mxu0 %v1961_v31 }
 0x17d   :  { %1964 = vmatprep.subr.bf16.mxu0 %v1963_v32 }
 0x180   :  { %1966 = vmatpush1.bf16.msra.mxu0 %v1965_v38 }
 0x181   :  { %1968 = vmatprep.subr.bf16.mxu0 %v1967_v39 }
 0x184   :  { %1970 = vmatpush1.bf16.msra.mxu0 %v1969_v44 }
 0x185   :  { %1972 = vmatprep.subr.bf16.mxu0 %v1971_v45 }
 0x188   :  { %1974 = vmatpush1.bf16.msra.mxu0 %v1973_v49 }
 0x189   :  { %1976 = vmatprep.subr.bf16.mxu0 %v1975_v50 }
 0x18c   :  { %1978 = vmatpush1.bf16.msra.mxu0 %v1977_v53 }
 0x18f   :  { %1282 = vmatmul.mubr.f32.vlgmr.msra.gmra.mrb[8].mxu0 %v2229_v33 }
 0x1a2   :  { %v857_v54 = vpop.f32.mrb[2].mxu0 }
 0x1a3   :  { %v928_v55 = vpop.f32.mrb[2].mxu1  ;;  %v859_v56 = vpop.f32.mrb[3].mxu0 }
 0x1a4   :  { %v1985_v57 = vpack.c.bf16 %v928_v55, %v857_v54  ;;  %v930_v58 = vpop.f32.mrb[3].mxu1 }
 0x1a5   :  { %v1983_v16 = vpack.c.bf16 %v930_v58, %v859_v56 }
 0x1a7   :  { %1984 = vmatprep.subr.bf16.mxu1 %v1983_v16 }
 0x1a8   :  { %1986 = vmatpush1.bf16.msra.mxu1 %v1985_v57 }
 0x1e2   :  { %v999_v59 = vpop.f32.mrb[4].mxu0 }
 0x1e3   :  { %v1070_v60 = vpop.f32.mrb[4].mxu1  ;;  %v1001_v61 = vpop.f32.mrb[5].mxu0 }
 0x1e4   :  { %v1989_v62 = vpack.c.bf16 %v1070_v60, %v999_v59  ;;  %v1072_v63 = vpop.f32.mrb[5].mxu1 }
 0x1e5   :  { %v1987_v0 = vpack.c.bf16 %v1072_v63, %v1001_v61 }
 0x1e7   :  { %1988 = vmatprep.subr.bf16.mxu1 %v1987_v0 }
 0x1e8   :  { %1990 = vmatpush1.bf16.msra.mxu1 %v1989_v62 }
 0x222   :  { %v1141_v2 = vpop.f32.mrb[6].mxu0 }
 0x223   :  { %v1212_v33 = vpop.f32.mrb[6].mxu1  ;;  %v1143_v3 = vpop.f32.mrb[7].mxu0 }
 0x224   :  { %v1993_v4 = vpack.c.bf16 %v1212_v33, %v1141_v2  ;;  %v1214_v5 = vpop.f32.mrb[7].mxu1 }
 0x225   :  { %v1991_v6 = vpack.c.bf16 %v1214_v5, %v1143_v3 }
 0x227   :  { %1992 = vmatprep.subr.bf16.mxu1 %v1991_v6 }
 0x228   :  { %1994 = vmatpush1.bf16.msra.mxu1 %v1993_v4 }
 0x262   :  { %v1283_v7 = vpop.f32.mrb[8].mxu0 }
 0x263   :  { %v1285_v8 = vpop.f32.mrb[9].mxu0 }
 0x264   :  { %1317 = vmatprep.subr.mxu1 %v1285_v8 }
 0x265   :  { %1318 = vmatpush1.msra.mxu1 %v1283_v7 }
 0x266   :  { %1401 = vmatmul.mubr.msk.f32.vlgmr.msra.gmra.mrb[8].mxu1 %vm1294_vm0, %v1288_v9 }
 0x267   :  { %1371 = vmatprep.mubr.f32.mxu1 %v2137_v1 }
 0x26a   :  { %1402 = vmatmul.mubr.msk.f32.gmra.mrb[10].mxu1 %vm1294_vm0, %v1289_v10 }
 0x339   :  { %v1367_v13 = vpop.f32.mrb[8].mxu1 }
 0x33a   :  { %v1368_v14 = vadd.f32 %v1367_v13, %v1290_v11  ;;  %v1369_v17 = vpop.f32.mrb[9].mxu1 }
 0x33b   :  { %v1370_v18 = vadd.f32 %v1369_v17, %v1291_v12 }
 0x33c   :  { %1378 = vst [vmem:[#allocation10] sm:$0xff] %v1368_v14 }
 0x33d   :  { %1379 = vst [vmem:[#allocation10 + $0x8] sm:$0xff] %v1370_v18  ;;  %v1373_v21 = vpop.f32.mrb[10].mxu1 }
 0x33e   :  { %v1374_v22 = vadd.f32 %v1373_v21, %v1292_v19  ;;  %v1375_v23 = vpop.f32.mrb[11].mxu1 }
 0x33f   :  { %v1376_v24 = vadd.f32 %v1375_v23, %v1293_v20 }
 0x340   :  { %1380 = vst [vmem:[#allocation10 + $0x10] sm:$0xff] %v1374_v22 }
 0x341   :  { %1381 = vst [vmem:[#allocation10 + $0x18] sm:$0xff] %v1376_v24 }
 0x342   :  { %2108 = shalt.err (!%p2105_p8)
}
 0x343   :  { %s2109_s17 = scalar_lea.hbm %s2260_s4, 512 }
 0x344   :  { %p2110_p9 = scmp.ne.s32.totalorder %s2260_s4, %s2109_s17  ;;  %p2113_p10 = scmp.lt.u32.totalorder %s2109_s17, %s2260_s4 }
 0x346   :  { %p2115_p11 = pnand %p2113_p10, %p2110_p9 }
 0x348   :  { %2118 = shalt.err (!%p2115_p11)
}
 0x349   :  { %1393 = dma.vmem_to_hbm [thread:$0]  %s1388_s1, 512, %s2260_s4, [#allocation4], %s2135_s2, %s2135_s2, %s2136_s6  }
 0x34a   :  { %2125 = dma.done.wait [#allocation4], 512  }
 0x34b   :  { %2126 = vsyncadd [#allocation4], 4294966784 }
 0x34c   :  { %1397 = vsyncpa [#allocation3], 1 }
 0x34d   :  { %1398 = vsyncpa [#allocation6], 1 }
 0x34e   :  { %1399 = vsyncpa [#allocation9], 1 }
 0x34f   :  { %1400 = vsyncpa [#allocation4], 1 }

</bundles_post_ra>
